<compile_context>
chip_gen: v5e
topology: v5e:2x2
jax: 0.10.0
libtpu: 0.0.40
codegen_flags: <defaults>
</compile_context>

<pallas_src>
import functools
import math

import jax
import jax.numpy as jnp
from jax.experimental import pallas as pl
from jax.experimental.pallas import tpu as pltpu


# ----------------------------------------------------------------------------
# Pallas kernel: fused bidirectional LSTM layer over the full sequence
# ----------------------------------------------------------------------------
def bilstm_kernel(x_ref, wxh_ref, whhf_ref, whhb_ref, b_ref, *rest,
                  seq_len, batch_pad, hidden_dim, emit_outputs, unroll):
    """Single invocation (grid=(1,)) running both directions interleaved.

    x_ref    : (S*Bp, E)   time-major flattened input
    wxh_ref  : (E, 8H)     [fwd | bwd] input->gate weights, gate order i,f,o,g
    whhf_ref : (H, 4H)     forward  hidden->gate weights (i,f,o,g)
    whhb_ref : (H, 4H)     backward hidden->gate weights (i,f,o,g)
    b_ref    : (1, 8H)     combined b_ih + b_hh for both directions
    outputs  : hlast (Bp, 2H) [, out_fwd (S*Bp, H), out_bwd (S*Bp, H)]
    scratch  : xg_f (S*Bp, 4H), xg_b (S*Bp, 4H) precomputed input gates
    """
    if emit_outputs:
        hlast_ref, outf_ref, outb_ref, xgf_ref, xgb_ref = rest
    else:
        hlast_ref, xgf_ref, xgb_ref = rest
        outf_ref = outb_ref = None

    S, Bp, H = seq_len, batch_pad, hidden_dim

    # (1) Fused input projection: every timestep, BOTH directions, one MXU
    #     matmul with N = 8H; bias folded in here, off the recurrent path.
    proj = jnp.dot(x_ref[...], wxh_ref[...],
                   preferred_element_type=jnp.float32) + b_ref[...]
    xgf_ref[...] = proj[:, : 4 * H]
    xgb_ref[...] = proj[:, 4 * H:]

    w_hf = whhf_ref[...]                       # (H, 4H), resident for the loop
    w_hb = whhb_ref[...]
    # TODO(synk): hold W_hh in MXU weight registers (matmul_push_rhs once,
    # matmul_acc_lhs/matmul_pop per step) to drop the per-step RHS push.

    def gate_update(gates, c):
        # Gate columns laid out (i | f | o | g): one contiguous sigmoid slab,
        # one tanh slab — 2 transcendental calls instead of 4 per direction.
        sig = jax.nn.sigmoid(gates[:, : 3 * H])
        g_g = jnp.tanh(gates[:, 3 * H:])
        i_g = sig[:, :H]
        f_g = sig[:, H:2 * H]
        o_g = sig[:, 2 * H:3 * H]
        c_new = f_g * c + i_g * g_g
        h_new = o_g * jnp.tanh(c_new)
        return h_new, c_new

    # (2) Recurrent loop: two independent carry chains (fwd, bwd) interleaved
    #     per iteration so their small matmuls / EUP calls overlap.
    def step(t, carry):
        h_f, c_f, h_b, c_b = carry
        row_f = pl.multiple_of(t * Bp, Bp)               # fwd reads time t
        row_b = pl.multiple_of((S - 1 - t) * Bp, Bp)     # bwd reads time S-1-t

        gates_f = xgf_ref[pl.ds(row_f, Bp), :] + jnp.dot(
            h_f, w_hf, preferred_element_type=jnp.float32)
        gates_b = xgb_ref[pl.ds(row_b, Bp), :] + jnp.dot(
            h_b, w_hb, preferred_element_type=jnp.float32)

        h_f, c_f = gate_update(gates_f, c_f)
        h_b, c_b = gate_update(gates_b, c_b)

        if emit_outputs:                                  # only residual path
            outf_ref[pl.ds(row_f, Bp), :] = h_f
            outb_ref[pl.ds(row_b, Bp), :] = h_b
        return h_f, c_f, h_b, c_b

    z = jnp.zeros((Bp, H), jnp.float32)
    h_f, _, h_b, _ = jax.lax.fori_loop(0, S, step, (z, z, z, z), unroll=unroll)

    # (3) Final hidden states written exactly once:
    #     (Bp, 2H) = [h_fwd(last step) | h_bwd(last step)]
    #     == torch.cat((hidden[-2], hidden[-1]), dim=1).
    hlast_ref[...] = jnp.concatenate([h_f, h_b], axis=-1)


# ----------------------------------------------------------------------------
# Pallas wrapper: one kernel launch per bidirectional layer
# ----------------------------------------------------------------------------
def fused_bilstm(x_flat, wxh, whh_f, whh_b, b, *, seq_len, batch_pad,
                 hidden_dim, emit_outputs=False, unroll=8):
    """Returns hlast (Bp, 2H); with emit_outputs also (out_fwd, out_bwd)."""
    SB, E = x_flat.shape
    H = hidden_dim
    assert SB == seq_len * batch_pad

    hlast_shape = jax.ShapeDtypeStruct((batch_pad, 2 * H), jnp.float32)
    hlast_spec = pl.BlockSpec((batch_pad, 2 * H), lambda i: (0, 0))
    if emit_outputs:
        out_shape = (hlast_shape,
                     jax.ShapeDtypeStruct((SB, H), jnp.float32),
                     jax.ShapeDtypeStruct((SB, H), jnp.float32))
        out_specs = (hlast_spec,
                     pl.BlockSpec((SB, H), lambda i: (0, 0)),
                     pl.BlockSpec((SB, H), lambda i: (0, 0)))
    else:
        out_shape = hlast_shape
        out_specs = hlast_spec

    # Explicit VMEM budget (defaults: 16 MiB v5e / 32 MiB v6e); 2x headroom
    # over the f32 resident set (inputs double-buffered + scratch + proj).
    # TODO(synk): chunk the time axis for production S instead of growing this.
    n_f32 = (2 * SB * E + 2 * E * 8 * H + 4 * H * 4 * H + 2 * 8 * H
             + 2 * batch_pad * 2 * H + 2 * SB * 4 * H + SB * 8 * H)
    if emit_outputs:
        n_f32 += 4 * SB * H
    vmem_limit = int(min(64 << 20, max(32 << 20, 8 * n_f32)))

    grid_spec = pltpu.PrefetchScalarGridSpec(
        num_scalar_prefetch=0,
        grid=(1,),
        in_specs=[
            pl.BlockSpec((SB, E), lambda i: (0, 0)),
            pl.BlockSpec((E, 8 * H), lambda i: (0, 0)),
            pl.BlockSpec((H, 4 * H), lambda i: (0, 0)),
            pl.BlockSpec((H, 4 * H), lambda i: (0, 0)),
            pl.BlockSpec((1, 8 * H), lambda i: (0, 0)),
        ],
        out_specs=out_specs,
        scratch_shapes=[pltpu.VMEM((SB, 4 * H), jnp.float32),   # xg fwd
                        pltpu.VMEM((SB, 4 * H), jnp.float32)],  # xg bwd
    )

    kernel = functools.partial(
        bilstm_kernel, seq_len=seq_len, batch_pad=batch_pad, hidden_dim=H,
        emit_outputs=emit_outputs, unroll=min(unroll, seq_len))

    return pl.pallas_call(
        kernel, out_shape=out_shape, grid_spec=grid_spec,
        compiler_params=pltpu.CompilerParams(
            dimension_semantics=("arbitrary",),
            vmem_limit_bytes=vmem_limit),
    )(x_flat, wxh, whh_f, whh_b, b)


# ----------------------------------------------------------------------------
# Parameter construction (deterministic, PyTorch-equivalent layouts)
# ----------------------------------------------------------------------------
def _ifgo_to_ifog(w):
    """Reorder PyTorch LSTM gate rows (i,f,g,o) -> kernel order (i,f,o,g)."""
    H = w.shape[0] // 4
    return jnp.concatenate([w[: 2 * H], w[3 * H:], w[2 * H:3 * H]], axis=0)


def make_bilstm_params(key, in_dim, hidden_dim):
    """PyTorch nn.LSTM init U(-1/sqrt(H), 1/sqrt(H)), converted to the fused
    kernel layout: wxh (in, 8H) = [fwd|bwd] with gate order (i,f,o,g)."""
    k = 1.0 / math.sqrt(hidden_dim)
    keys = jax.random.split(key, 8)

    def u(kk, shape):
        return jax.random.uniform(kk, shape, jnp.float32, -k, k)

    wx_cols, wh, b_cols = [], [], []
    for d in range(2):                                    # 0 = fwd, 1 = bwd
        w_ih = u(keys[4 * d + 0], (4 * hidden_dim, in_dim))      # (i,f,g,o)
        w_hh = u(keys[4 * d + 1], (4 * hidden_dim, hidden_dim))
        b_ih = u(keys[4 * d + 2], (4 * hidden_dim,))
        b_hh = u(keys[4 * d + 3], (4 * hidden_dim,))
        wx_cols.append(jnp.transpose(_ifgo_to_ifog(w_ih)))       # (in, 4H)
        wh.append(jnp.transpose(_ifgo_to_ifog(w_hh)))            # (H, 4H)
        b_cols.append(_ifgo_to_ifog(b_ih + b_hh))                # (4H,)

    return {
        "wxh": jnp.concatenate(wx_cols, axis=1),                  # (in, 8H)
        "whh_f": wh[0], "whh_b": wh[1],                           # (H, 4H)
        "b": jnp.concatenate(b_cols).reshape(1, 8 * hidden_dim),  # (1, 8H)
    }


def make_params(key, vocab_size, embed_dim, hidden_dim, num_layers, num_classes):
    keys = jax.random.split(key, 4 + num_layers)
    emb = jax.random.normal(keys[0], (vocab_size, embed_dim), jnp.float32)
    emb = emb.at[1].set(0.0)                                      # padding_idx=1

    lstm1 = make_bilstm_params(keys[1], embed_dim, hidden_dim)
    lstm_layers = [make_bilstm_params(keys[2 + i], 2 * hidden_dim, hidden_dim)
                   for i in range(num_layers - 1)]

    kfc = 1.0 / math.sqrt(2 * hidden_dim)
    fc_w = jax.random.uniform(keys[-2], (num_classes, 2 * hidden_dim),
                              jnp.float32, -kfc, kfc)
    fc_b = jax.random.uniform(keys[-1], (num_classes,), jnp.float32, -kfc, kfc)

    return {"embedding": emb, "hidden_dim": hidden_dim, "lstm1": lstm1,
            "lstm_layers": lstm_layers, "fc_w": fc_w, "fc_b": fc_b}


# ----------------------------------------------------------------------------
# Full forward pass
# ----------------------------------------------------------------------------
def residual_lstm_forward(token_ids, params, *, compute_residual_stack=False):
    B, S = token_ids.shape
    emb = params["embedding"]
    H = params["hidden_dim"]

    # Pad batch up to the f32 sublane count (>= 8) so vregs / MXU rows fill.
    Bp = max(8, -(-B // 8) * 8)

    # Embedding gather directly in time-major order (S, B, E).  Dropout is
    # identity in eval mode.
    x = jnp.take(emb, jnp.transpose(token_ids), axis=0)           # (S, B, E)
    if Bp != B:
        x = jnp.pad(x, ((0, 0), (0, Bp - B), (0, 0)))
    E = x.shape[-1]
    x_flat = x.reshape(S * Bp, E)                                 # (S*Bp, E)

    p1 = params["lstm1"]
    if compute_residual_stack:
        # Residual stack: output = output + lstm_i(output).  Its result is
        # dead when use_attention=False (the head reads lstm1's final hidden
        # states), so this branch exists only for completeness.
        hlast, of, ob = fused_bilstm(
            x_flat, p1["wxh"], p1["whh_f"], p1["whh_b"], p1["b"],
            seq_len=S, batch_pad=Bp, hidden_dim=H, emit_outputs=True)
        output = jnp.concatenate([of, ob], axis=-1)               # (S*Bp, 2H)
        for lp in params["lstm_layers"]:
            _, nf, nb = fused_bilstm(
                output, lp["wxh"], lp["whh_f"], lp["whh_b"], lp["b"],
                seq_len=S, batch_pad=Bp, hidden_dim=H, emit_outputs=True)
            output = output + jnp.concatenate([nf, nb], axis=-1)
    else:
        # Default path: per-timestep outputs are dead -> kernel emits only
        # the final hidden states (no out_ref stores, no HBM writeback).
        hlast = fused_bilstm(
            x_flat, p1["wxh"], p1["whh_f"], p1["whh_b"], p1["b"],
            seq_len=S, batch_pad=Bp, hidden_dim=H, emit_outputs=False)

    hidden_final = hlast[:B]                                      # (B, 2H)

    # Tiny classifier head: plain XLA (a pallas_call launch would cost far
    # more than the ~1.3 kFLOP matmul).  Dropout identity in eval.
    logits = hidden_final @ jnp.transpose(params["fc_w"]) + params["fc_b"]
    return logits                                                 # (B, C)


# ----------------------------------------------------------------------------
# Demo
# ----------------------------------------------------------------------------
if __name__ == "__main__":
    VOCAB = 100
    EMBED_DIM = 64
    HIDDEN_DIM = 32
    NUM_LAYERS = 2
    NUM_CLASSES = 5
    BATCH = 2
    SEQ = 8

    root = jax.random.PRNGKey(0)
    k_par, k_tok = jax.random.split(root)
    params = make_params(k_par, VOCAB, EMBED_DIM, HIDDEN_DIM,
                         NUM_LAYERS, NUM_CLASSES)
    token_ids = jax.random.randint(k_tok, (BATCH, SEQ), 0, VOCAB, jnp.int32)

    fwd = jax.jit(lambda ids: residual_lstm_forward(ids, params))
    logits = fwd(token_ids)
    jax.block_until_ready(logits)

    assert logits.shape == (BATCH, NUM_CLASSES)
    assert bool(jnp.all(jnp.isfinite(logits)))
    print("KERNEL_OK")
</pallas_src>

<mosaic_0001>
module attributes {stable_mosaic.version = 11 : i64} {
  func.func @bilstm_kernel(%arg0: i32, %arg1: memref<64x64xf32, #tpu.memory_space<vmem>>, %arg2: memref<64x256xf32, #tpu.memory_space<vmem>>, %arg3: memref<32x128xf32, #tpu.memory_space<vmem>>, %arg4: memref<32x128xf32, #tpu.memory_space<vmem>>, %arg5: memref<1x256xf32, #tpu.memory_space<vmem>>, %arg6: memref<8x64xf32, #tpu.memory_space<vmem>>, %arg7: memref<64x128xf32, #tpu.memory_space<vmem>>, %arg8: memref<64x128xf32, #tpu.memory_space<vmem>>) attributes {dimension_semantics = [#tpu.dimension_semantics<arbitrary>], iteration_bounds = array<i64: 1>, scalar_prefetch = 0 : i64, scratch_operands = 2 : i64, tpu.core_type = #tpu.core_type<tc>, window_params = [{pipeline_mode = #tpu.pipeline_mode<synchronous>, transform_indices = @transform_0, window_bounds = array<i64: 64, 64>}, {pipeline_mode = #tpu.pipeline_mode<synchronous>, transform_indices = @transform_1, window_bounds = array<i64: 64, 256>}, {pipeline_mode = #tpu.pipeline_mode<synchronous>, transform_indices = @transform_2, window_bounds = array<i64: 32, 128>}, {pipeline_mode = #tpu.pipeline_mode<synchronous>, transform_indices = @transform_3, window_bounds = array<i64: 32, 128>}, {pipeline_mode = #tpu.pipeline_mode<synchronous>, transform_indices = @transform_4, window_bounds = array<i64: 1, 256>}, {pipeline_mode = #tpu.pipeline_mode<synchronous>, transform_indices = @transform_5, window_bounds = array<i64: 8, 64>}]} {
    %c0 = arith.constant 0 : index
    %c0_0 = arith.constant 0 : index
    %0 = vector.load %arg1[%c0, %c0_0] : memref<64x64xf32, #tpu.memory_space<vmem>>, vector<64x64xf32>
    %c0_1 = arith.constant 0 : index
    %c0_2 = arith.constant 0 : index
    %1 = vector.load %arg2[%c0_1, %c0_2] : memref<64x256xf32, #tpu.memory_space<vmem>>, vector<64x256xf32>
    %cst = arith.constant dense<0.000000e+00> : vector<64x256xf32>
    %2 = tpu.matmul %0, %1, %cst {dimension_numbers = #tpu.dot_dimension_numbers<[1], [0], [0], [1], [0, 0, 1, 1], [], []>} : vector<64x64xf32>, vector<64x256xf32>, vector<64x256xf32> -> vector<64x256xf32>
    %c0_3 = arith.constant 0 : index
    %c0_4 = arith.constant 0 : index
    %3 = vector.load %arg5[%c0_3, %c0_4] : memref<1x256xf32, #tpu.memory_space<vmem>>, vector<1x256xf32>
    %4 = vector.broadcast %3 : vector<1x256xf32> to vector<64x256xf32>
    %5 = arith.addf %2, %4 : vector<64x256xf32>
    %6 = vector.extract_strided_slice %5 {offsets = [0, 0], sizes = [64, 128], strides = [1, 1]} : vector<64x256xf32> to vector<64x128xf32>
    %c0_5 = arith.constant 0 : index
    %c0_6 = arith.constant 0 : index
    %7 = vector.load %arg7[%c0_5, %c0_6] : memref<64x128xf32, #tpu.memory_space<vmem>>, vector<64x128xf32>
    tpu.vector_store %arg7[%c0_5, %c0_6], %6 {strides = array<i32>} : memref<64x128xf32, #tpu.memory_space<vmem>>, vector<64x128xf32>,
    %8 = vector.extract_strided_slice %5 {offsets = [0, 128], sizes = [64, 128], strides = [1, 1]} : vector<64x256xf32> to vector<64x128xf32>
    %c0_7 = arith.constant 0 : index
    %c0_8 = arith.constant 0 : index
    %9 = vector.load %arg8[%c0_7, %c0_8] : memref<64x128xf32, #tpu.memory_space<vmem>>, vector<64x128xf32>
    tpu.vector_store %arg8[%c0_7, %c0_8], %8 {strides = array<i32>} : memref<64x128xf32, #tpu.memory_space<vmem>>, vector<64x128xf32>,
    %c0_9 = arith.constant 0 : index
    %c0_10 = arith.constant 0 : index
    %10 = vector.load %arg3[%c0_9, %c0_10] : memref<32x128xf32, #tpu.memory_space<vmem>>, vector<32x128xf32>
    %c0_11 = arith.constant 0 : index
    %c0_12 = arith.constant 0 : index
    %11 = vector.load %arg4[%c0_11, %c0_12] : memref<32x128xf32, #tpu.memory_space<vmem>>, vector<32x128xf32>
    %cst_13 = arith.constant 0.000000e+00 : f32
    %12 = vector.broadcast %cst_13 : f32 to vector<8x32xf32>
    %c0_i32 = arith.constant 0 : i32
    %c8_i32 = arith.constant 8 : i32
    %13 = arith.muli %c0_i32, %c8_i32 : i32
    %14 = tpu.assume_multiple %13, 8 : i32
    %c7_i32 = arith.constant 7 : i32
    %15 = arith.subi %c7_i32, %c0_i32 : i32
    %c8_i32_14 = arith.constant 8 : i32
    %16 = arith.muli %15, %c8_i32_14 : i32
    %17 = tpu.assume_multiple %16, 8 : i32
    %18 = arith.index_cast %14 : i32 to index
    %c0_15 = arith.constant 0 : index
    %19 = vector.load %arg7[%18, %c0_15] : memref<64x128xf32, #tpu.memory_space<vmem>>, vector<8x128xf32>
    %cst_16 = arith.constant dense<0.000000e+00> : vector<8x128xf32>
    %20 = tpu.matmul %12, %10, %cst_16 {dimension_numbers = #tpu.dot_dimension_numbers<[1], [0], [0], [1], [0, 0, 1, 1], [], []>} : vector<8x32xf32>, vector<32x128xf32>, vector<8x128xf32> -> vector<8x128xf32>
    %21 = arith.addf %19, %20 : vector<8x128xf32>
    %22 = arith.index_cast %17 : i32 to index
    %c0_17 = arith.constant 0 : index
    %23 = vector.load %arg8[%22, %c0_17] : memref<64x128xf32, #tpu.memory_space<vmem>>, vector<8x128xf32>
    %cst_18 = arith.constant dense<0.000000e+00> : vector<8x128xf32>
    %24 = tpu.matmul %12, %11, %cst_18 {dimension_numbers = #tpu.dot_dimension_numbers<[1], [0], [0], [1], [0, 0, 1, 1], [], []>} : vector<8x32xf32>, vector<32x128xf32>, vector<8x128xf32> -> vector<8x128xf32>
    %25 = arith.addf %23, %24 : vector<8x128xf32>
    %26 = vector.extract_strided_slice %21 {offsets = [0, 0], sizes = [8, 96], strides = [1, 1]} : vector<8x128xf32> to vector<8x96xf32>
    %27 = arith.negf %26 : vector<8x96xf32>
    %28 = math.exp %27 : vector<8x96xf32>
    %cst_19 = arith.constant 1.000000e+00 : f32
    %29 = vector.broadcast %cst_19 : f32 to vector<8x96xf32>
    %30 = arith.addf %29, %28 : vector<8x96xf32>
    %31 = arith.divf %29, %30 : vector<8x96xf32>
    %32 = vector.extract_strided_slice %21 {offsets = [0, 96], sizes = [8, 32], strides = [1, 1]} : vector<8x128xf32> to vector<8x32xf32>
    %33 = math.tanh %32 : vector<8x32xf32>
    %34 = vector.extract_strided_slice %31 {offsets = [0, 0], sizes = [8, 32], strides = [1, 1]} : vector<8x96xf32> to vector<8x32xf32>
    %35 = vector.extract_strided_slice %31 {offsets = [0, 32], sizes = [8, 32], strides = [1, 1]} : vector<8x96xf32> to vector<8x32xf32>
    %36 = vector.extract_strided_slice %31 {offsets = [0, 64], sizes = [8, 32], strides = [1, 1]} : vector<8x96xf32> to vector<8x32xf32>
    %37 = arith.mulf %35, %12 : vector<8x32xf32>
    %38 = arith.mulf %34, %33 : vector<8x32xf32>
    %39 = arith.addf %37, %38 : vector<8x32xf32>
    %40 = math.tanh %39 : vector<8x32xf32>
    %41 = arith.mulf %36, %40 : vector<8x32xf32>
    %42 = vector.extract_strided_slice %25 {offsets = [0, 0], sizes = [8, 96], strides = [1, 1]} : vector<8x128xf32> to vector<8x96xf32>
    %43 = arith.negf %42 : vector<8x96xf32>
    %44 = math.exp %43 : vector<8x96xf32>
    %cst_20 = arith.constant 1.000000e+00 : f32
    %45 = vector.broadcast %cst_20 : f32 to vector<8x96xf32>
    %46 = arith.addf %45, %44 : vector<8x96xf32>
    %47 = arith.divf %45, %46 : vector<8x96xf32>
    %48 = vector.extract_strided_slice %25 {offsets = [0, 96], sizes = [8, 32], strides = [1, 1]} : vector<8x128xf32> to vector<8x32xf32>
    %49 = math.tanh %48 : vector<8x32xf32>
    %50 = vector.extract_strided_slice %47 {offsets = [0, 0], sizes = [8, 32], strides = [1, 1]} : vector<8x96xf32> to vector<8x32xf32>
    %51 = vector.extract_strided_slice %47 {offsets = [0, 32], sizes = [8, 32], strides = [1, 1]} : vector<8x96xf32> to vector<8x32xf32>
    %52 = vector.extract_strided_slice %47 {offsets = [0, 64], sizes = [8, 32], strides = [1, 1]} : vector<8x96xf32> to vector<8x32xf32>
    %53 = arith.mulf %51, %12 : vector<8x32xf32>
    %54 = arith.mulf %50, %49 : vector<8x32xf32>
    %55 = arith.addf %53, %54 : vector<8x32xf32>
    %56 = math.tanh %55 : vector<8x32xf32>
    %57 = arith.mulf %52, %56 : vector<8x32xf32>
    %c1_i32 = arith.constant 1 : i32
    %c8_i32_21 = arith.constant 8 : i32
    %58 = arith.muli %c1_i32, %c8_i32_21 : i32
    %59 = tpu.assume_multiple %58, 8 : i32
    %c7_i32_22 = arith.constant 7 : i32
    %60 = arith.subi %c7_i32_22, %c1_i32 : i32
    %c8_i32_23 = arith.constant 8 : i32
    %61 = arith.muli %60, %c8_i32_23 : i32
    %62 = tpu.assume_multiple %61, 8 : i32
    %63 = arith.index_cast %59 : i32 to index
    %c0_24 = arith.constant 0 : index
    %64 = vector.load %arg7[%63, %c0_24] : memref<64x128xf32, #tpu.memory_space<vmem>>, vector<8x128xf32>
    %cst_25 = arith.constant dense<0.000000e+00> : vector<8x128xf32>
    %65 = tpu.matmul %41, %10, %cst_25 {dimension_numbers = #tpu.dot_dimension_numbers<[1], [0], [0], [1], [0, 0, 1, 1], [], []>} : vector<8x32xf32>, vector<32x128xf32>, vector<8x128xf32> -> vector<8x128xf32>
    %66 = arith.addf %64, %65 : vector<8x128xf32>
    %67 = arith.index_cast %62 : i32 to index
    %c0_26 = arith.constant 0 : index
    %68 = vector.load %arg8[%67, %c0_26] : memref<64x128xf32, #tpu.memory_space<vmem>>, vector<8x128xf32>
    %cst_27 = arith.constant dense<0.000000e+00> : vector<8x128xf32>
    %69 = tpu.matmul %57, %11, %cst_27 {dimension_numbers = #tpu.dot_dimension_numbers<[1], [0], [0], [1], [0, 0, 1, 1], [], []>} : vector<8x32xf32>, vector<32x128xf32>, vector<8x128xf32> -> vector<8x128xf32>
    %70 = arith.addf %68, %69 : vector<8x128xf32>
    %71 = vector.extract_strided_slice %66 {offsets = [0, 0], sizes = [8, 96], strides = [1, 1]} : vector<8x128xf32> to vector<8x96xf32>
    %72 = arith.negf %71 : vector<8x96xf32>
    %73 = math.exp %72 : vector<8x96xf32>
    %cst_28 = arith.constant 1.000000e+00 : f32
    %74 = vector.broadcast %cst_28 : f32 to vector<8x96xf32>
    %75 = arith.addf %74, %73 : vector<8x96xf32>
    %76 = arith.divf %74, %75 : vector<8x96xf32>
    %77 = vector.extract_strided_slice %66 {offsets = [0, 96], sizes = [8, 32], strides = [1, 1]} : vector<8x128xf32> to vector<8x32xf32>
    %78 = math.tanh %77 : vector<8x32xf32>
    %79 = vector.extract_strided_slice %76 {offsets = [0, 0], sizes = [8, 32], strides = [1, 1]} : vector<8x96xf32> to vector<8x32xf32>
    %80 = vector.extract_strided_slice %76 {offsets = [0, 32], sizes = [8, 32], strides = [1, 1]} : vector<8x96xf32> to vector<8x32xf32>
    %81 = vector.extract_strided_slice %76 {offsets = [0, 64], sizes = [8, 32], strides = [1, 1]} : vector<8x96xf32> to vector<8x32xf32>
    %82 = arith.mulf %80, %39 : vector<8x32xf32>
    %83 = arith.mulf %79, %78 : vector<8x32xf32>
    %84 = arith.addf %82, %83 : vector<8x32xf32>
    %85 = math.tanh %84 : vector<8x32xf32>
    %86 = arith.mulf %81, %85 : vector<8x32xf32>
    %87 = vector.extract_strided_slice %70 {offsets = [0, 0], sizes = [8, 96], strides = [1, 1]} : vector<8x128xf32> to vector<8x96xf32>
    %88 = arith.negf %87 : vector<8x96xf32>
    %89 = math.exp %88 : vector<8x96xf32>
    %cst_29 = arith.constant 1.000000e+00 : f32
    %90 = vector.broadcast %cst_29 : f32 to vector<8x96xf32>
    %91 = arith.addf %90, %89 : vector<8x96xf32>
    %92 = arith.divf %90, %91 : vector<8x96xf32>
    %93 = vector.extract_strided_slice %70 {offsets = [0, 96], sizes = [8, 32], strides = [1, 1]} : vector<8x128xf32> to vector<8x32xf32>
    %94 = math.tanh %93 : vector<8x32xf32>
    %95 = vector.extract_strided_slice %92 {offsets = [0, 0], sizes = [8, 32], strides = [1, 1]} : vector<8x96xf32> to vector<8x32xf32>
    %96 = vector.extract_strided_slice %92 {offsets = [0, 32], sizes = [8, 32], strides = [1, 1]} : vector<8x96xf32> to vector<8x32xf32>
    %97 = vector.extract_strided_slice %92 {offsets = [0, 64], sizes = [8, 32], strides = [1, 1]} : vector<8x96xf32> to vector<8x32xf32>
    %98 = arith.mulf %96, %55 : vector<8x32xf32>
    %99 = arith.mulf %95, %94 : vector<8x32xf32>
    %100 = arith.addf %98, %99 : vector<8x32xf32>
    %101 = math.tanh %100 : vector<8x32xf32>
    %102 = arith.mulf %97, %101 : vector<8x32xf32>
    %c2_i32 = arith.constant 2 : i32
    %c8_i32_30 = arith.constant 8 : i32
    %103 = arith.muli %c2_i32, %c8_i32_30 : i32
    %104 = tpu.assume_multiple %103, 8 : i32
    %c7_i32_31 = arith.constant 7 : i32
    %105 = arith.subi %c7_i32_31, %c2_i32 : i32
    %c8_i32_32 = arith.constant 8 : i32
    %106 = arith.muli %105, %c8_i32_32 : i32
    %107 = tpu.assume_multiple %106, 8 : i32
    %108 = arith.index_cast %104 : i32 to index
    %c0_33 = arith.constant 0 : index
    %109 = vector.load %arg7[%108, %c0_33] : memref<64x128xf32, #tpu.memory_space<vmem>>, vector<8x128xf32>
    %cst_34 = arith.constant dense<0.000000e+00> : vector<8x128xf32>
    %110 = tpu.matmul %86, %10, %cst_34 {dimension_numbers = #tpu.dot_dimension_numbers<[1], [0], [0], [1], [0, 0, 1, 1], [], []>} : vector<8x32xf32>, vector<32x128xf32>, vector<8x128xf32> -> vector<8x128xf32>
    %111 = arith.addf %109, %110 : vector<8x128xf32>
    %112 = arith.index_cast %107 : i32 to index
    %c0_35 = arith.constant 0 : index
    %113 = vector.load %arg8[%112, %c0_35] : memref<64x128xf32, #tpu.memory_space<vmem>>, vector<8x128xf32>
    %cst_36 = arith.constant dense<0.000000e+00> : vector<8x128xf32>
    %114 = tpu.matmul %102, %11, %cst_36 {dimension_numbers = #tpu.dot_dimension_numbers<[1], [0], [0], [1], [0, 0, 1, 1], [], []>} : vector<8x32xf32>, vector<32x128xf32>, vector<8x128xf32> -> vector<8x128xf32>
    %115 = arith.addf %113, %114 : vector<8x128xf32>
    %116 = vector.extract_strided_slice %111 {offsets = [0, 0], sizes = [8, 96], strides = [1, 1]} : vector<8x128xf32> to vector<8x96xf32>
    %117 = arith.negf %116 : vector<8x96xf32>
    %118 = math.exp %117 : vector<8x96xf32>
    %cst_37 = arith.constant 1.000000e+00 : f32
    %119 = vector.broadcast %cst_37 : f32 to vector<8x96xf32>
    %120 = arith.addf %119, %118 : vector<8x96xf32>
    %121 = arith.divf %119, %120 : vector<8x96xf32>
    %122 = vector.extract_strided_slice %111 {offsets = [0, 96], sizes = [8, 32], strides = [1, 1]} : vector<8x128xf32> to vector<8x32xf32>
    %123 = math.tanh %122 : vector<8x32xf32>
    %124 = vector.extract_strided_slice %121 {offsets = [0, 0], sizes = [8, 32], strides = [1, 1]} : vector<8x96xf32> to vector<8x32xf32>
    %125 = vector.extract_strided_slice %121 {offsets = [0, 32], sizes = [8, 32], strides = [1, 1]} : vector<8x96xf32> to vector<8x32xf32>
    %126 = vector.extract_strided_slice %121 {offsets = [0, 64], sizes = [8, 32], strides = [1, 1]} : vector<8x96xf32> to vector<8x32xf32>
    %127 = arith.mulf %125, %84 : vector<8x32xf32>
    %128 = arith.mulf %124, %123 : vector<8x32xf32>
    %129 = arith.addf %127, %128 : vector<8x32xf32>
    %130 = math.tanh %129 : vector<8x32xf32>
    %131 = arith.mulf %126, %130 : vector<8x32xf32>
    %132 = vector.extract_strided_slice %115 {offsets = [0, 0], sizes = [8, 96], strides = [1, 1]} : vector<8x128xf32> to vector<8x96xf32>
    %133 = arith.negf %132 : vector<8x96xf32>
    %134 = math.exp %133 : vector<8x96xf32>
    %cst_38 = arith.constant 1.000000e+00 : f32
    %135 = vector.broadcast %cst_38 : f32 to vector<8x96xf32>
    %136 = arith.addf %135, %134 : vector<8x96xf32>
    %137 = arith.divf %135, %136 : vector<8x96xf32>
    %138 = vector.extract_strided_slice %115 {offsets = [0, 96], sizes = [8, 32], strides = [1, 1]} : vector<8x128xf32> to vector<8x32xf32>
    %139 = math.tanh %138 : vector<8x32xf32>
    %140 = vector.extract_strided_slice %137 {offsets = [0, 0], sizes = [8, 32], strides = [1, 1]} : vector<8x96xf32> to vector<8x32xf32>
    %141 = vector.extract_strided_slice %137 {offsets = [0, 32], sizes = [8, 32], strides = [1, 1]} : vector<8x96xf32> to vector<8x32xf32>
    %142 = vector.extract_strided_slice %137 {offsets = [0, 64], sizes = [8, 32], strides = [1, 1]} : vector<8x96xf32> to vector<8x32xf32>
    %143 = arith.mulf %141, %100 : vector<8x32xf32>
    %144 = arith.mulf %140, %139 : vector<8x32xf32>
    %145 = arith.addf %143, %144 : vector<8x32xf32>
    %146 = math.tanh %145 : vector<8x32xf32>
    %147 = arith.mulf %142, %146 : vector<8x32xf32>
    %c3_i32 = arith.constant 3 : i32
    %c8_i32_39 = arith.constant 8 : i32
    %148 = arith.muli %c3_i32, %c8_i32_39 : i32
    %149 = tpu.assume_multiple %148, 8 : i32
    %c7_i32_40 = arith.constant 7 : i32
    %150 = arith.subi %c7_i32_40, %c3_i32 : i32
    %c8_i32_41 = arith.constant 8 : i32
    %151 = arith.muli %150, %c8_i32_41 : i32
    %152 = tpu.assume_multiple %151, 8 : i32
    %153 = arith.index_cast %149 : i32 to index
    %c0_42 = arith.constant 0 : index
    %154 = vector.load %arg7[%153, %c0_42] : memref<64x128xf32, #tpu.memory_space<vmem>>, vector<8x128xf32>
    %cst_43 = arith.constant dense<0.000000e+00> : vector<8x128xf32>
    %155 = tpu.matmul %131, %10, %cst_43 {dimension_numbers = #tpu.dot_dimension_numbers<[1], [0], [0], [1], [0, 0, 1, 1], [], []>} : vector<8x32xf32>, vector<32x128xf32>, vector<8x128xf32> -> vector<8x128xf32>
    %156 = arith.addf %154, %155 : vector<8x128xf32>
    %157 = arith.index_cast %152 : i32 to index
    %c0_44 = arith.constant 0 : index
    %158 = vector.load %arg8[%157, %c0_44] : memref<64x128xf32, #tpu.memory_space<vmem>>, vector<8x128xf32>
    %cst_45 = arith.constant dense<0.000000e+00> : vector<8x128xf32>
    %159 = tpu.matmul %147, %11, %cst_45 {dimension_numbers = #tpu.dot_dimension_numbers<[1], [0], [0], [1], [0, 0, 1, 1], [], []>} : vector<8x32xf32>, vector<32x128xf32>, vector<8x128xf32> -> vector<8x128xf32>
    %160 = arith.addf %158, %159 : vector<8x128xf32>
    %161 = vector.extract_strided_slice %156 {offsets = [0, 0], sizes = [8, 96], strides = [1, 1]} : vector<8x128xf32> to vector<8x96xf32>
    %162 = arith.negf %161 : vector<8x96xf32>
    %163 = math.exp %162 : vector<8x96xf32>
    %cst_46 = arith.constant 1.000000e+00 : f32
    %164 = vector.broadcast %cst_46 : f32 to vector<8x96xf32>
    %165 = arith.addf %164, %163 : vector<8x96xf32>
    %166 = arith.divf %164, %165 : vector<8x96xf32>
    %167 = vector.extract_strided_slice %156 {offsets = [0, 96], sizes = [8, 32], strides = [1, 1]} : vector<8x128xf32> to vector<8x32xf32>
    %168 = math.tanh %167 : vector<8x32xf32>
    %169 = vector.extract_strided_slice %166 {offsets = [0, 0], sizes = [8, 32], strides = [1, 1]} : vector<8x96xf32> to vector<8x32xf32>
    %170 = vector.extract_strided_slice %166 {offsets = [0, 32], sizes = [8, 32], strides = [1, 1]} : vector<8x96xf32> to vector<8x32xf32>
    %171 = vector.extract_strided_slice %166 {offsets = [0, 64], sizes = [8, 32], strides = [1, 1]} : vector<8x96xf32> to vector<8x32xf32>
    %172 = arith.mulf %170, %129 : vector<8x32xf32>
    %173 = arith.mulf %169, %168 : vector<8x32xf32>
    %174 = arith.addf %172, %173 : vector<8x32xf32>
    %175 = math.tanh %174 : vector<8x32xf32>
    %176 = arith.mulf %171, %175 : vector<8x32xf32>
    %177 = vector.extract_strided_slice %160 {offsets = [0, 0], sizes = [8, 96], strides = [1, 1]} : vector<8x128xf32> to vector<8x96xf32>
    %178 = arith.negf %177 : vector<8x96xf32>
    %179 = math.exp %178 : vector<8x96xf32>
    %cst_47 = arith.constant 1.000000e+00 : f32
    %180 = vector.broadcast %cst_47 : f32 to vector<8x96xf32>
    %181 = arith.addf %180, %179 : vector<8x96xf32>
    %182 = arith.divf %180, %181 : vector<8x96xf32>
    %183 = vector.extract_strided_slice %160 {offsets = [0, 96], sizes = [8, 32], strides = [1, 1]} : vector<8x128xf32> to vector<8x32xf32>
    %184 = math.tanh %183 : vector<8x32xf32>
    %185 = vector.extract_strided_slice %182 {offsets = [0, 0], sizes = [8, 32], strides = [1, 1]} : vector<8x96xf32> to vector<8x32xf32>
    %186 = vector.extract_strided_slice %182 {offsets = [0, 32], sizes = [8, 32], strides = [1, 1]} : vector<8x96xf32> to vector<8x32xf32>
    %187 = vector.extract_strided_slice %182 {offsets = [0, 64], sizes = [8, 32], strides = [1, 1]} : vector<8x96xf32> to vector<8x32xf32>
    %188 = arith.mulf %186, %145 : vector<8x32xf32>
    %189 = arith.mulf %185, %184 : vector<8x32xf32>
    %190 = arith.addf %188, %189 : vector<8x32xf32>
    %191 = math.tanh %190 : vector<8x32xf32>
    %192 = arith.mulf %187, %191 : vector<8x32xf32>
    %c4_i32 = arith.constant 4 : i32
    %c8_i32_48 = arith.constant 8 : i32
    %193 = arith.muli %c4_i32, %c8_i32_48 : i32
    %194 = tpu.assume_multiple %193, 8 : i32
    %c7_i32_49 = arith.constant 7 : i32
    %195 = arith.subi %c7_i32_49, %c4_i32 : i32
    %c8_i32_50 = arith.constant 8 : i32
    %196 = arith.muli %195, %c8_i32_50 : i32
    %197 = tpu.assume_multiple %196, 8 : i32
    %198 = arith.index_cast %194 : i32 to index
    %c0_51 = arith.constant 0 : index
    %199 = vector.load %arg7[%198, %c0_51] : memref<64x128xf32, #tpu.memory_space<vmem>>, vector<8x128xf32>
    %cst_52 = arith.constant dense<0.000000e+00> : vector<8x128xf32>
    %200 = tpu.matmul %176, %10, %cst_52 {dimension_numbers = #tpu.dot_dimension_numbers<[1], [0], [0], [1], [0, 0, 1, 1], [], []>} : vector<8x32xf32>, vector<32x128xf32>, vector<8x128xf32> -> vector<8x128xf32>
    %201 = arith.addf %199, %200 : vector<8x128xf32>
    %202 = arith.index_cast %197 : i32 to index
    %c0_53 = arith.constant 0 : index
    %203 = vector.load %arg8[%202, %c0_53] : memref<64x128xf32, #tpu.memory_space<vmem>>, vector<8x128xf32>
    %cst_54 = arith.constant dense<0.000000e+00> : vector<8x128xf32>
    %204 = tpu.matmul %192, %11, %cst_54 {dimension_numbers = #tpu.dot_dimension_numbers<[1], [0], [0], [1], [0, 0, 1, 1], [], []>} : vector<8x32xf32>, vector<32x128xf32>, vector<8x128xf32> -> vector<8x128xf32>
    %205 = arith.addf %203, %204 : vector<8x128xf32>
    %206 = vector.extract_strided_slice %201 {offsets = [0, 0], sizes = [8, 96], strides = [1, 1]} : vector<8x128xf32> to vector<8x96xf32>
    %207 = arith.negf %206 : vector<8x96xf32>
    %208 = math.exp %207 : vector<8x96xf32>
    %cst_55 = arith.constant 1.000000e+00 : f32
    %209 = vector.broadcast %cst_55 : f32 to vector<8x96xf32>
    %210 = arith.addf %209, %208 : vector<8x96xf32>
    %211 = arith.divf %209, %210 : vector<8x96xf32>
    %212 = vector.extract_strided_slice %201 {offsets = [0, 96], sizes = [8, 32], strides = [1, 1]} : vector<8x128xf32> to vector<8x32xf32>
    %213 = math.tanh %212 : vector<8x32xf32>
    %214 = vector.extract_strided_slice %211 {offsets = [0, 0], sizes = [8, 32], strides = [1, 1]} : vector<8x96xf32> to vector<8x32xf32>
    %215 = vector.extract_strided_slice %211 {offsets = [0, 32], sizes = [8, 32], strides = [1, 1]} : vector<8x96xf32> to vector<8x32xf32>
    %216 = vector.extract_strided_slice %211 {offsets = [0, 64], sizes = [8, 32], strides = [1, 1]} : vector<8x96xf32> to vector<8x32xf32>
    %217 = arith.mulf %215, %174 : vector<8x32xf32>
    %218 = arith.mulf %214, %213 : vector<8x32xf32>
    %219 = arith.addf %217, %218 : vector<8x32xf32>
    %220 = math.tanh %219 : vector<8x32xf32>
    %221 = arith.mulf %216, %220 : vector<8x32xf32>
    %222 = vector.extract_strided_slice %205 {offsets = [0, 0], sizes = [8, 96], strides = [1, 1]} : vector<8x128xf32> to vector<8x96xf32>
    %223 = arith.negf %222 : vector<8x96xf32>
    %224 = math.exp %223 : vector<8x96xf32>
    %cst_56 = arith.constant 1.000000e+00 : f32
    %225 = vector.broadcast %cst_56 : f32 to vector<8x96xf32>
    %226 = arith.addf %225, %224 : vector<8x96xf32>
    %227 = arith.divf %225, %226 : vector<8x96xf32>
    %228 = vector.extract_strided_slice %205 {offsets = [0, 96], sizes = [8, 32], strides = [1, 1]} : vector<8x128xf32> to vector<8x32xf32>
    %229 = math.tanh %228 : vector<8x32xf32>
    %230 = vector.extract_strided_slice %227 {offsets = [0, 0], sizes = [8, 32], strides = [1, 1]} : vector<8x96xf32> to vector<8x32xf32>
    %231 = vector.extract_strided_slice %227 {offsets = [0, 32], sizes = [8, 32], strides = [1, 1]} : vector<8x96xf32> to vector<8x32xf32>
    %232 = vector.extract_strided_slice %227 {offsets = [0, 64], sizes = [8, 32], strides = [1, 1]} : vector<8x96xf32> to vector<8x32xf32>
    %233 = arith.mulf %231, %190 : vector<8x32xf32>
    %234 = arith.mulf %230, %229 : vector<8x32xf32>
    %235 = arith.addf %233, %234 : vector<8x32xf32>
    %236 = math.tanh %235 : vector<8x32xf32>
    %237 = arith.mulf %232, %236 : vector<8x32xf32>
    %c5_i32 = arith.constant 5 : i32
    %c8_i32_57 = arith.constant 8 : i32
    %238 = arith.muli %c5_i32, %c8_i32_57 : i32
    %239 = tpu.assume_multiple %238, 8 : i32
    %c7_i32_58 = arith.constant 7 : i32
    %240 = arith.subi %c7_i32_58, %c5_i32 : i32
    %c8_i32_59 = arith.constant 8 : i32
    %241 = arith.muli %240, %c8_i32_59 : i32
    %242 = tpu.assume_multiple %241, 8 : i32
    %243 = arith.index_cast %239 : i32 to index
    %c0_60 = arith.constant 0 : index
    %244 = vector.load %arg7[%243, %c0_60] : memref<64x128xf32, #tpu.memory_space<vmem>>, vector<8x128xf32>
    %cst_61 = arith.constant dense<0.000000e+00> : vector<8x128xf32>
    %245 = tpu.matmul %221, %10, %cst_61 {dimension_numbers = #tpu.dot_dimension_numbers<[1], [0], [0], [1], [0, 0, 1, 1], [], []>} : vector<8x32xf32>, vector<32x128xf32>, vector<8x128xf32> -> vector<8x128xf32>
    %246 = arith.addf %244, %245 : vector<8x128xf32>
    %247 = arith.index_cast %242 : i32 to index
    %c0_62 = arith.constant 0 : index
    %248 = vector.load %arg8[%247, %c0_62] : memref<64x128xf32, #tpu.memory_space<vmem>>, vector<8x128xf32>
    %cst_63 = arith.constant dense<0.000000e+00> : vector<8x128xf32>
    %249 = tpu.matmul %237, %11, %cst_63 {dimension_numbers = #tpu.dot_dimension_numbers<[1], [0], [0], [1], [0, 0, 1, 1], [], []>} : vector<8x32xf32>, vector<32x128xf32>, vector<8x128xf32> -> vector<8x128xf32>
    %250 = arith.addf %248, %249 : vector<8x128xf32>
    %251 = vector.extract_strided_slice %246 {offsets = [0, 0], sizes = [8, 96], strides = [1, 1]} : vector<8x128xf32> to vector<8x96xf32>
    %252 = arith.negf %251 : vector<8x96xf32>
    %253 = math.exp %252 : vector<8x96xf32>
    %cst_64 = arith.constant 1.000000e+00 : f32
    %254 = vector.broadcast %cst_64 : f32 to vector<8x96xf32>
    %255 = arith.addf %254, %253 : vector<8x96xf32>
    %256 = arith.divf %254, %255 : vector<8x96xf32>
    %257 = vector.extract_strided_slice %246 {offsets = [0, 96], sizes = [8, 32], strides = [1, 1]} : vector<8x128xf32> to vector<8x32xf32>
    %258 = math.tanh %257 : vector<8x32xf32>
    %259 = vector.extract_strided_slice %256 {offsets = [0, 0], sizes = [8, 32], strides = [1, 1]} : vector<8x96xf32> to vector<8x32xf32>
    %260 = vector.extract_strided_slice %256 {offsets = [0, 32], sizes = [8, 32], strides = [1, 1]} : vector<8x96xf32> to vector<8x32xf32>
    %261 = vector.extract_strided_slice %256 {offsets = [0, 64], sizes = [8, 32], strides = [1, 1]} : vector<8x96xf32> to vector<8x32xf32>
    %262 = arith.mulf %260, %219 : vector<8x32xf32>
    %263 = arith.mulf %259, %258 : vector<8x32xf32>
    %264 = arith.addf %262, %263 : vector<8x32xf32>
    %265 = math.tanh %264 : vector<8x32xf32>
    %266 = arith.mulf %261, %265 : vector<8x32xf32>
    %267 = vector.extract_strided_slice %250 {offsets = [0, 0], sizes = [8, 96], strides = [1, 1]} : vector<8x128xf32> to vector<8x96xf32>
    %268 = arith.negf %267 : vector<8x96xf32>
    %269 = math.exp %268 : vector<8x96xf32>
    %cst_65 = arith.constant 1.000000e+00 : f32
    %270 = vector.broadcast %cst_65 : f32 to vector<8x96xf32>
    %271 = arith.addf %270, %269 : vector<8x96xf32>
    %272 = arith.divf %270, %271 : vector<8x96xf32>
    %273 = vector.extract_strided_slice %250 {offsets = [0, 96], sizes = [8, 32], strides = [1, 1]} : vector<8x128xf32> to vector<8x32xf32>
    %274 = math.tanh %273 : vector<8x32xf32>
    %275 = vector.extract_strided_slice %272 {offsets = [0, 0], sizes = [8, 32], strides = [1, 1]} : vector<8x96xf32> to vector<8x32xf32>
    %276 = vector.extract_strided_slice %272 {offsets = [0, 32], sizes = [8, 32], strides = [1, 1]} : vector<8x96xf32> to vector<8x32xf32>
    %277 = vector.extract_strided_slice %272 {offsets = [0, 64], sizes = [8, 32], strides = [1, 1]} : vector<8x96xf32> to vector<8x32xf32>
    %278 = arith.mulf %276, %235 : vector<8x32xf32>
    %279 = arith.mulf %275, %274 : vector<8x32xf32>
    %280 = arith.addf %278, %279 : vector<8x32xf32>
    %281 = math.tanh %280 : vector<8x32xf32>
    %282 = arith.mulf %277, %281 : vector<8x32xf32>
    %c6_i32 = arith.constant 6 : i32
    %c8_i32_66 = arith.constant 8 : i32
    %283 = arith.muli %c6_i32, %c8_i32_66 : i32
    %284 = tpu.assume_multiple %283, 8 : i32
    %c7_i32_67 = arith.constant 7 : i32
    %285 = arith.subi %c7_i32_67, %c6_i32 : i32
    %c8_i32_68 = arith.constant 8 : i32
    %286 = arith.muli %285, %c8_i32_68 : i32
    %287 = tpu.assume_multiple %286, 8 : i32
    %288 = arith.index_cast %284 : i32 to index
    %c0_69 = arith.constant 0 : index
    %289 = vector.load %arg7[%288, %c0_69] : memref<64x128xf32, #tpu.memory_space<vmem>>, vector<8x128xf32>
    %cst_70 = arith.constant dense<0.000000e+00> : vector<8x128xf32>
    %290 = tpu.matmul %266, %10, %cst_70 {dimension_numbers = #tpu.dot_dimension_numbers<[1], [0], [0], [1], [0, 0, 1, 1], [], []>} : vector<8x32xf32>, vector<32x128xf32>, vector<8x128xf32> -> vector<8x128xf32>
    %291 = arith.addf %289, %290 : vector<8x128xf32>
    %292 = arith.index_cast %287 : i32 to index
    %c0_71 = arith.constant 0 : index
    %293 = vector.load %arg8[%292, %c0_71] : memref<64x128xf32, #tpu.memory_space<vmem>>, vector<8x128xf32>
    %cst_72 = arith.constant dense<0.000000e+00> : vector<8x128xf32>
    %294 = tpu.matmul %282, %11, %cst_72 {dimension_numbers = #tpu.dot_dimension_numbers<[1], [0], [0], [1], [0, 0, 1, 1], [], []>} : vector<8x32xf32>, vector<32x128xf32>, vector<8x128xf32> -> vector<8x128xf32>
    %295 = arith.addf %293, %294 : vector<8x128xf32>
    %296 = vector.extract_strided_slice %291 {offsets = [0, 0], sizes = [8, 96], strides = [1, 1]} : vector<8x128xf32> to vector<8x96xf32>
    %297 = arith.negf %296 : vector<8x96xf32>
    %298 = math.exp %297 : vector<8x96xf32>
    %cst_73 = arith.constant 1.000000e+00 : f32
    %299 = vector.broadcast %cst_73 : f32 to vector<8x96xf32>
    %300 = arith.addf %299, %298 : vector<8x96xf32>
    %301 = arith.divf %299, %300 : vector<8x96xf32>
    %302 = vector.extract_strided_slice %291 {offsets = [0, 96], sizes = [8, 32], strides = [1, 1]} : vector<8x128xf32> to vector<8x32xf32>
    %303 = math.tanh %302 : vector<8x32xf32>
    %304 = vector.extract_strided_slice %301 {offsets = [0, 0], sizes = [8, 32], strides = [1, 1]} : vector<8x96xf32> to vector<8x32xf32>
    %305 = vector.extract_strided_slice %301 {offsets = [0, 32], sizes = [8, 32], strides = [1, 1]} : vector<8x96xf32> to vector<8x32xf32>
    %306 = vector.extract_strided_slice %301 {offsets = [0, 64], sizes = [8, 32], strides = [1, 1]} : vector<8x96xf32> to vector<8x32xf32>
    %307 = arith.mulf %305, %264 : vector<8x32xf32>
    %308 = arith.mulf %304, %303 : vector<8x32xf32>
    %309 = arith.addf %307, %308 : vector<8x32xf32>
    %310 = math.tanh %309 : vector<8x32xf32>
    %311 = arith.mulf %306, %310 : vector<8x32xf32>
    %312 = vector.extract_strided_slice %295 {offsets = [0, 0], sizes = [8, 96], strides = [1, 1]} : vector<8x128xf32> to vector<8x96xf32>
    %313 = arith.negf %312 : vector<8x96xf32>
    %314 = math.exp %313 : vector<8x96xf32>
    %cst_74 = arith.constant 1.000000e+00 : f32
    %315 = vector.broadcast %cst_74 : f32 to vector<8x96xf32>
    %316 = arith.addf %315, %314 : vector<8x96xf32>
    %317 = arith.divf %315, %316 : vector<8x96xf32>
    %318 = vector.extract_strided_slice %295 {offsets = [0, 96], sizes = [8, 32], strides = [1, 1]} : vector<8x128xf32> to vector<8x32xf32>
    %319 = math.tanh %318 : vector<8x32xf32>
    %320 = vector.extract_strided_slice %317 {offsets = [0, 0], sizes = [8, 32], strides = [1, 1]} : vector<8x96xf32> to vector<8x32xf32>
    %321 = vector.extract_strided_slice %317 {offsets = [0, 32], sizes = [8, 32], strides = [1, 1]} : vector<8x96xf32> to vector<8x32xf32>
    %322 = vector.extract_strided_slice %317 {offsets = [0, 64], sizes = [8, 32], strides = [1, 1]} : vector<8x96xf32> to vector<8x32xf32>
    %323 = arith.mulf %321, %280 : vector<8x32xf32>
    %324 = arith.mulf %320, %319 : vector<8x32xf32>
    %325 = arith.addf %323, %324 : vector<8x32xf32>
    %326 = math.tanh %325 : vector<8x32xf32>
    %327 = arith.mulf %322, %326 : vector<8x32xf32>
    %c7_i32_75 = arith.constant 7 : i32
    %c8_i32_76 = arith.constant 8 : i32
    %328 = arith.muli %c7_i32_75, %c8_i32_76 : i32
    %329 = tpu.assume_multiple %328, 8 : i32
    %c7_i32_77 = arith.constant 7 : i32
    %330 = arith.subi %c7_i32_77, %c7_i32_75 : i32
    %c8_i32_78 = arith.constant 8 : i32
    %331 = arith.muli %330, %c8_i32_78 : i32
    %332 = tpu.assume_multiple %331, 8 : i32
    %333 = arith.index_cast %329 : i32 to index
    %c0_79 = arith.constant 0 : index
    %334 = vector.load %arg7[%333, %c0_79] : memref<64x128xf32, #tpu.memory_space<vmem>>, vector<8x128xf32>
    %cst_80 = arith.constant dense<0.000000e+00> : vector<8x128xf32>
    %335 = tpu.matmul %311, %10, %cst_80 {dimension_numbers = #tpu.dot_dimension_numbers<[1], [0], [0], [1], [0, 0, 1, 1], [], []>} : vector<8x32xf32>, vector<32x128xf32>, vector<8x128xf32> -> vector<8x128xf32>
    %336 = arith.addf %334, %335 : vector<8x128xf32>
    %337 = arith.index_cast %332 : i32 to index
    %c0_81 = arith.constant 0 : index
    %338 = vector.load %arg8[%337, %c0_81] : memref<64x128xf32, #tpu.memory_space<vmem>>, vector<8x128xf32>
    %cst_82 = arith.constant dense<0.000000e+00> : vector<8x128xf32>
    %339 = tpu.matmul %327, %11, %cst_82 {dimension_numbers = #tpu.dot_dimension_numbers<[1], [0], [0], [1], [0, 0, 1, 1], [], []>} : vector<8x32xf32>, vector<32x128xf32>, vector<8x128xf32> -> vector<8x128xf32>
    %340 = arith.addf %338, %339 : vector<8x128xf32>
    %341 = vector.extract_strided_slice %336 {offsets = [0, 0], sizes = [8, 96], strides = [1, 1]} : vector<8x128xf32> to vector<8x96xf32>
    %342 = arith.negf %341 : vector<8x96xf32>
    %343 = math.exp %342 : vector<8x96xf32>
    %cst_83 = arith.constant 1.000000e+00 : f32
    %344 = vector.broadcast %cst_83 : f32 to vector<8x96xf32>
    %345 = arith.addf %344, %343 : vector<8x96xf32>
    %346 = arith.divf %344, %345 : vector<8x96xf32>
    %347 = vector.extract_strided_slice %336 {offsets = [0, 96], sizes = [8, 32], strides = [1, 1]} : vector<8x128xf32> to vector<8x32xf32>
    %348 = math.tanh %347 : vector<8x32xf32>
    %349 = vector.extract_strided_slice %346 {offsets = [0, 0], sizes = [8, 32], strides = [1, 1]} : vector<8x96xf32> to vector<8x32xf32>
    %350 = vector.extract_strided_slice %346 {offsets = [0, 32], sizes = [8, 32], strides = [1, 1]} : vector<8x96xf32> to vector<8x32xf32>
    %351 = vector.extract_strided_slice %346 {offsets = [0, 64], sizes = [8, 32], strides = [1, 1]} : vector<8x96xf32> to vector<8x32xf32>
    %352 = arith.mulf %350, %309 : vector<8x32xf32>
    %353 = arith.mulf %349, %348 : vector<8x32xf32>
    %354 = arith.addf %352, %353 : vector<8x32xf32>
    %355 = math.tanh %354 : vector<8x32xf32>
    %356 = arith.mulf %351, %355 : vector<8x32xf32>
    %357 = vector.extract_strided_slice %340 {offsets = [0, 0], sizes = [8, 96], strides = [1, 1]} : vector<8x128xf32> to vector<8x96xf32>
    %358 = arith.negf %357 : vector<8x96xf32>
    %359 = math.exp %358 : vector<8x96xf32>
    %cst_84 = arith.constant 1.000000e+00 : f32
    %360 = vector.broadcast %cst_84 : f32 to vector<8x96xf32>
    %361 = arith.addf %360, %359 : vector<8x96xf32>
    %362 = arith.divf %360, %361 : vector<8x96xf32>
    %363 = vector.extract_strided_slice %340 {offsets = [0, 96], sizes = [8, 32], strides = [1, 1]} : vector<8x128xf32> to vector<8x32xf32>
    %364 = math.tanh %363 : vector<8x32xf32>
    %365 = vector.extract_strided_slice %362 {offsets = [0, 0], sizes = [8, 32], strides = [1, 1]} : vector<8x96xf32> to vector<8x32xf32>
    %366 = vector.extract_strided_slice %362 {offsets = [0, 32], sizes = [8, 32], strides = [1, 1]} : vector<8x96xf32> to vector<8x32xf32>
    %367 = vector.extract_strided_slice %362 {offsets = [0, 64], sizes = [8, 32], strides = [1, 1]} : vector<8x96xf32> to vector<8x32xf32>
    %368 = arith.mulf %366, %325 : vector<8x32xf32>
    %369 = arith.mulf %365, %364 : vector<8x32xf32>
    %370 = arith.addf %368, %369 : vector<8x32xf32>
    %371 = math.tanh %370 : vector<8x32xf32>
    %372 = arith.mulf %367, %371 : vector<8x32xf32>
    %c8_i32_85 = arith.constant 8 : i32
    %373 = tpu.concatenate %356, %372 in 1 : vector<8x32xf32>, vector<8x32xf32> -> vector<8x64xf32>
    %c0_86 = arith.constant 0 : index
    %c0_87 = arith.constant 0 : index
    %374 = vector.load %arg6[%c0_86, %c0_87] : memref<8x64xf32, #tpu.memory_space<vmem>>, vector<8x64xf32>
    tpu.vector_store %arg6[%c0_86, %c0_87], %373 {strides = array<i32>} : memref<8x64xf32, #tpu.memory_space<vmem>>, vector<8x64xf32>,
    return
  }
  func.func @transform_0(%arg0: i32) -> (i32, i32) {
    %c0_i32 = arith.constant 0 : i32
    %c0_i32_0 = arith.constant 0 : i32
    %c0_i32_1 = arith.constant 0 : i32
    return %c0_i32, %c0_i32_0 : i32, i32
  }
  func.func @transform_1(%arg0: i32) -> (i32, i32) {
    %c0_i32 = arith.constant 0 : i32
    %c0_i32_0 = arith.constant 0 : i32
    %c0_i32_1 = arith.constant 0 : i32
    return %c0_i32, %c0_i32_0 : i32, i32
  }
  func.func @transform_2(%arg0: i32) -> (i32, i32) {
    %c0_i32 = arith.constant 0 : i32
    %c0_i32_0 = arith.constant 0 : i32
    %c0_i32_1 = arith.constant 0 : i32
    return %c0_i32, %c0_i32_0 : i32, i32
  }
  func.func @transform_3(%arg0: i32) -> (i32, i32) {
    %c0_i32 = arith.constant 0 : i32
    %c0_i32_0 = arith.constant 0 : i32
    %c0_i32_1 = arith.constant 0 : i32
    return %c0_i32, %c0_i32_0 : i32, i32
  }
  func.func @transform_4(%arg0: i32) -> (i32, i32) {
    %c0_i32 = arith.constant 0 : i32
    %c0_i32_0 = arith.constant 0 : i32
    %c0_i32_1 = arith.constant 0 : i32
    return %c0_i32, %c0_i32_0 : i32, i32
  }
  func.func @transform_5(%arg0: i32) -> (i32, i32) {
    %c0_i32 = arith.constant 0 : i32
    %c0_i32_0 = arith.constant 0 : i32
    %c0_i32_1 = arith.constant 0 : i32
    return %c0_i32, %c0_i32_0 : i32, i32
  }
}

</mosaic_0001>

<bundles_post_ra>
// kernel: _lambda_.1
= control target key start
LH: loop header
LB: loop body
LE: loop exit
PB: predicated region body
PF: predicated region fallthrough
CT: control target
= control target key end

     0   :  { %v1409_v18 = vmov 0.0   ;;  %vm50_vm0 = vcmask 523264   ;;  %vm182_vm9 = vcmask 261120   ;;  %s1815_s1 = inlined_call_operand.vmem [shape: f32[64,256], index: 1, kind: input, shape index: {}]   ;;  %s1816_s2 = inlined_call_operand.vmem [shape: f32[32,128], index: 2, kind: input, shape index: {}]   ;;  %s1817_s0 = inlined_call_operand.vmem [shape: f32[64,64], index: 0, kind: input, shape index: {}]   ;;  %s1818_s3 = inlined_call_operand.vmem [shape: f32[32,128], index: 3, kind: input, shape index: {}]   ;;  %s1819_s4 = inlined_call_operand.vmem [shape: f32[1,256], index: 4, kind: input, shape index: {}]   ;;  %s1820_s5 = inlined_call_operand.vmem [shape: f32[8,64], index: 5, kind: output, shape index: {}]  }
   0x1   :  { %v42_v0 = vld [vmem:[%s1815_s1 + $0x70] sm:$0xff]  ;;  %v43_v1 = vld [vmem:[%s1815_s1 + $0x78] sm:$0xff]  ;;  %v40_v2 = vld [vmem:[%s1815_s1 + $0x60] sm:$0xff] }
   0x2   :  { %83 = vmatpush.msra.mxu0 %v42_v0  ;;  %124 = vmatpush.msra.mxu1 %v43_v1  ;;  %v41_v3 = vld [vmem:[%s1815_s1 + $0x68] sm:$0xff]  ;;  %v38_v4 = vld [vmem:[%s1815_s1 + $0x50] sm:$0xff]  ;;  %v39_v5 = vld [vmem:[%s1815_s1 + $0x58] sm:$0xff] }
   0x3   :  { %v1464_v6 = vld [vmem:[%s1816_s2 + $0x18] sm:$0xff]  ;;  %v1469_v7 = vld [vmem:[%s1816_s2 + $0x10] sm:$0xff]  ;;  %v36_v8 = vld [vmem:[%s1815_s1 + $0x40] sm:$0xff] }
   0x4   :  { %84 = vmatpush.msra.mxu0 %v40_v2  ;;  %125 = vmatpush.msra.mxu1 %v41_v3  ;;  %v37_v9 = vld [vmem:[%s1815_s1 + $0x48] sm:$0xff]  ;;  %v34_v11 = vld [vmem:[%s1815_s1 + $0x30] sm:$0xff]  ;;  %v35_v12 = vld [vmem:[%s1815_s1 + $0x38] sm:$0xff] }
   0x5   :  { %198 = vmatpush.msra.mxu2 %v1464_v6  ;;  %v1481_v10 = vld [vmem:[%s1816_s2 + $0x8] sm:$0xff]  ;;  %v1493_v13 = vld [vmem:[%s1816_s2] sm:$0xff]  ;;  %v30_v16 = vld [vmem:[%s1815_s1 + $0x10] sm:$0xff] }
   0x6   :  { %85 = vmatpush.msra.mxu0 %v38_v4  ;;  %126 = vmatpush.msra.mxu1 %v39_v5  ;;  %v32_v14 = vld [vmem:[%s1815_s1 + $0x20] sm:$0xff]  ;;  %v33_v15 = vld [vmem:[%s1815_s1 + $0x28] sm:$0xff]  ;;  %v31_v17 = vld [vmem:[%s1815_s1 + $0x18] sm:$0xff] }
   0x7   :  { %199 = vmatpush.msra.mxu2 %v1469_v7  ;;  %v28_v19 = vld [vmem:[%s1815_s1] sm:$0xff]  ;;  %v29_v20 = vld [vmem:[%s1815_s1 + $0x8] sm:$0xff]  ;;  %v1532_v23 = vld [vmem:[%s1818_s3 + $0x18] sm:$0xff] }
   0x8   :  { %86 = vmatpush.msra.mxu0 %v36_v8  ;;  %127 = vmatpush.msra.mxu1 %v37_v9  ;;  %v20_v21 = vld [vmem:[%s1817_s0] sm:$0xff]  ;;  %v21_v22 = vld [vmem:[%s1817_s0 + $0x8] sm:$0xff]  ;;  %v1537_v24 = vld [vmem:[%s1818_s3 + $0x10] sm:$0xff] }
   0x9   :  { %200 = vmatpush.msra.mxu2 %v1481_v10  ;;  %221 = vmatpush.msra.mxu3 %v1532_v23  ;;  %v22_v25 = vld [vmem:[%s1817_s0 + $0x10] sm:$0xff]  ;;  %v1552_v26 = vld [vmem:[%s1818_s3 + $0x8] sm:$0xff]  ;;  %v1557_v27 = vld [vmem:[%s1818_s3] sm:$0xff] }
   0xa   :  { %87 = vmatpush.msra.mxu0 %v34_v11  ;;  %128 = vmatpush.msra.mxu1 %v35_v12  ;;  %v23_v28 = vld [vmem:[%s1817_s0 + $0x18] sm:$0xff]  ;;  %v24_v29 = vld [vmem:[%s1817_s0 + $0x20] sm:$0xff]  ;;  %v25_v30 = vld [vmem:[%s1817_s0 + $0x28] sm:$0xff] }
   0xb   :  { %201 = vmatpush.msra.mxu2 %v1493_v13  ;;  %222 = vmatpush.msra.mxu3 %v1537_v24  ;;  %v26_v31 = vld [vmem:[%s1817_s0 + $0x30] sm:$0xff]  ;;  %v27_v32 = vld [vmem:[%s1817_s0 + $0x38] sm:$0xff]  ;;  %v44_v33 = vld [vmem:[%s1819_s4] sm:$0x3]  ;;  %s1410_s0 = smov 32   ;;  %s1411_s4 = smov 64  }
   0xc   :  { %88 = vmatpush.msra.mxu0 %v32_v14  ;;  %129 = vmatpush.msra.mxu1 %v33_v15  ;;  %v1598_v34 = vperm.slane %v44_v33, 0  ;;  %v47_v35 = vperm.slane %v44_v33, 1 }
   0xd   :  { %202 = vmatmul.f32.vlgmr.msra.gmra.mxu2 %v1409_v18  ;;  %223 = vmatpush.msra.mxu3 %v1552_v26 }
   0xe   :  { %89 = vmatpush.msra.mxu0 %v30_v16  ;;  %130 = vmatpush.msra.mxu1 %v31_v17 }
   0xf   :  { %323 = vmatpush.msrb.mxu2 %v1464_v6  ;;  %224 = vmatpush.msra.mxu3 %v1557_v27 }
  0x10   :  { %90 = vmatpush.msra.mxu0 %v28_v19  ;;  %131 = vmatpush.msra.mxu1 %v29_v20 }
  0x11   :  { %1227 = vmatmul.msk.f32.vlgmr.msra.gmra.mxu0 %vm50_vm0, %v20_v21  ;;  %1235 = vmatmul.msk.f32.vlgmr.msra.gmra.mxu1 %vm50_vm0, %v20_v21 }
  0x12   :  { %324 = vmatpush.msrb.mxu2 %v1469_v7  ;;  %225 = vmatmul.f32.vlgmr.msra.gmra.mxu3 %v1409_v18 }
  0x13   :  { %351 = vmatpush.msrb.mxu3 %v1532_v23 }
  0x14   :  { %325 = vmatpush.msrb.mxu2 %v1481_v10 }
  0x15   :  { %352 = vmatpush.msrb.mxu3 %v1537_v24 }
  0x16   :  { %326 = vmatpush.msrb.mxu2 %v1493_v13 }
  0x17   :  { %353 = vmatpush.msrb.mxu3 %v1552_v26 }
  0x18   :  { %453 = vmatpush.msra.mxu2 %v1464_v6 }
  0x19   :  { %1236 = vmatmul.msk.f32.gmra.mxu1 %vm50_vm0, %v21_v22  ;;  %1228 = vmatmul.msk.f32.gmra.mxu0 %vm50_vm0, %v21_v22 }
  0x1a   :  { %454 = vmatpush.msra.mxu2 %v1469_v7  ;;  %354 = vmatpush.msrb.mxu3 %v1557_v27 }
  0x1c   :  { %455 = vmatpush.msra.mxu2 %v1481_v10  ;;  %481 = vmatpush.msra.mxu3 %v1532_v23 }
  0x1e   :  { %456 = vmatpush.msra.mxu2 %v1493_v13  ;;  %482 = vmatpush.msra.mxu3 %v1537_v24 }
  0x20   :  { %483 = vmatpush.msra.mxu3 %v1552_v26 }
  0x21   :  { %1237 = vmatmul.msk.f32.gmra.mxu1 %vm50_vm0, %v22_v25  ;;  %1229 = vmatmul.msk.f32.gmra.mxu0 %vm50_vm0, %v22_v25 }
  0x22   :  { %484 = vmatpush.msra.mxu3 %v1557_v27 }
  0x29   :  { %1238 = vmatmul.msk.f32.gmra.mxu1 %vm50_vm0, %v23_v28  ;;  %1230 = vmatmul.msk.f32.gmra.mxu0 %vm50_vm0, %v23_v28 }
  0x31   :  { %1239 = vmatmul.msk.f32.gmra.mxu1 %vm50_vm0, %v24_v29  ;;  %1231 = vmatmul.msk.f32.gmra.mxu0 %vm50_vm0, %v24_v29 }
  0x39   :  { %1240 = vmatmul.msk.f32.gmra.mxu1 %vm50_vm0, %v25_v30  ;;  %1232 = vmatmul.msk.f32.gmra.mxu0 %vm50_vm0, %v25_v30 }
  0x41   :  { %1241 = vmatmul.msk.f32.gmra.mxu1 %vm50_vm0, %v26_v31  ;;  %1233 = vmatmul.msk.f32.gmra.mxu0 %vm50_vm0, %v26_v31 }
  0x49   :  { %1242 = vmatmul.msk.f32.gmra.mxu1 %vm50_vm0, %v27_v32  ;;  %1234 = vmatmul.msk.f32.gmra.mxu0 %vm50_vm0, %v27_v32 }
  0x8e   :  { %v92_v36 = vpop.f32.mrf.mxu0  ;;  %v133_v37 = vpop.f32.mrf.mxu1 }
  0x8f   :  { %v93_v38 = vadd.f32 %v92_v36, %v1598_v34  ;;  %v1601_v39 = vadd.f32 %v133_v37, %v47_v35 }
  0x90   :  { %v203_v40 = vpop.f32.mrf.mxu2 }
  0x91   :  { %v206_v41 = vadd.f32 %v203_v40, %v93_v38 }
  0x93   :  { %1277 = vtanh.f32 %v206_v41  ;;  %v1243_v60 = vmul.f32 -1.442695, %v206_v41 }
  0x95   :  { %v226_v56 = vpop.f32.mrf.mxu3 }
  0x96   :  { %v136_v42 = vpop.f32.mrf.mxu1 }
  0x97   :  { %v1603_v43 = vadd.f32 %v136_v42, %v47_v35 }
  0x99   :  { %v1278_v44 = vpop.eup %1277 }
  0x9a   :  { %252 = vrot.lane.b32.xlu0 %v1278_v44, %s1410_s0 }
  0x9e   :  { %v139_v45 = vpop.f32.mrf.mxu1 }
  0x9f   :  { %v1606_v46 = vadd.f32 %v139_v45, %v47_v35 }
  0xa6   :  { %v142_v47 = vpop.f32.mrf.mxu1 }
  0xa7   :  { %v1608_v48 = vadd.f32 %v142_v47, %v47_v35 }
  0xae   :  { %v145_v49 = vpop.f32.mrf.mxu1 }
  0xaf   :  { %v1610_v50 = vadd.f32 %v145_v49, %v47_v35 }
  0xb6   :  { %v148_v51 = vpop.f32.mrf.mxu1 }
  0xb7   :  { %v1612_v52 = vadd.f32 %v148_v51, %v47_v35 }
  0xbe   :  { %v151_v53 = vpop.f32.mrf.mxu1 }
  0xbf   :  { %v1614_v54 = vadd.f32 %v151_v53, %v47_v35 }
  0xc6   :  { %v154_v55 = vpop.f32.mrf.mxu1 }
  0xc7   :  { %v155_v57 = vadd.f32 %v154_v55, %v47_v35 }
  0xc9   :  { %v229_v58 = vadd.f32 %v226_v56, %v155_v57  ;;  %v95_v56 = vpop.f32.mrf.mxu0 }
  0xca   :  { %v96_v57 = vadd.f32 %v95_v56, %v1598_v34 }
  0xcb   :  { %1279 = vtanh.f32 %v229_v58  ;;  %v1244_v15 = vmul.f32 -1.442695, %v229_v58 }
  0xcc   :  { %1281 = vpow2.f32 %v1243_v60 }
  0xd1   :  { %v1280_v59 = vpop.eup %1279 }
  0xd2   :  { %289 = vrot.lane.b32.xlu0 %v1280_v59, %s1410_s0  ;;  %v1282_v61 = vpop.eup %1281 }
  0xd3   :  { %v233_v62 = vadd.f32 1.0, %v1282_v61 }
  0xd5   :  { %1283 = vrcp.f32 %v233_v62  ;;  %vm239_vm1 = vweird.f32 %v233_v62  ;;  %v245_v3 = vand.u32 2147483648, %v233_v62  ;;  %v243_v5 = vand.u32 2147483647, %v233_v62 }
  0xd6   :  { %1285 = vpow2.f32 %v1244_v15 }
  0xd7   :  { %v246_v8 = vor.u32 1.1754944e-38, %v245_v3  ;;  %vm244_vm4 = vcmp.eq.f32.partialorder %v243_v5, 8.507059e+37 }
  0xdb   :  { %v1284_v63 = vpop.eup %1283 }
  0xdc   :  { %v235_v0 = vmul.f32 %v1284_v63, %v233_v62  ;;  %vm240_vm2 = vweird.f32 %v1284_v63  ;;  %v1286_v16 = vpop.eup %1285 }
  0xdd   :  { %vm241_vm3 = vmor %vm239_vm1, %vm240_vm2  ;;  %v270_v17 = vadd.f32 1.0, %v1286_v16 }
  0xde   :  { %v236_v1 = vsub.f32 1.0, %v235_v0 }
  0xdf   :  { %1287 = vrcp.f32 %v270_v17  ;;  %v282_v25 = vand.u32 2147483648, %v270_v17  ;;  %vm276_vm6 = vweird.f32 %v270_v17  ;;  %v280_v28 = vand.u32 2147483647, %v270_v17 }
  0xe0   :  { %v237_v2 = vmul.f32 %v1284_v63, %v236_v1 }
  0xe1   :  { %v283_v30 = vor.u32 1.1754944e-38, %v282_v25  ;;  %vm281_vm8 = vcmp.eq.f32.partialorder %v280_v28, 8.507059e+37 }
  0xe2   :  { %v238_v4 = vadd.f32 %v1284_v63, %v237_v2 }
  0xe4   :  { %v242_v9 = vsel %vm241_vm3, %v1284_v63, %v238_v4 }
  0xe5   :  { %v247_v12 = vsel %vm244_vm4, %v246_v8, %v242_v9  ;;  %v1288_v18 = vpop.eup %1287 }
  0xe6   :  { %v272_v19 = vmul.f32 %v1288_v18, %v270_v17  ;;  %vm277_vm5 = vweird.f32 %v1288_v18  ;;  %v250_v35 = vmul.f32 0.0, %v247_v12 }
  0xe7   :  { %vm278_vm7 = vmor %vm276_vm6, %vm277_vm5 }
  0xe8   :  { %v273_v20 = vsub.f32 1.0, %v272_v19 }
  0xea   :  { %v274_v21 = vmul.f32 %v1288_v18, %v273_v20 }
  0xec   :  { %v275_v22 = vadd.f32 %v1288_v18, %v274_v21 }
  0xee   :  { %v279_v29 = vsel %vm278_vm7, %v1288_v18, %v275_v22 }
  0xef   :  { %v284_v31 = vsel %vm281_vm8, %v283_v30, %v279_v29 }
  0xf0   :  { %v287_v40 = vmul.f32 0.0, %v284_v31 }
 0x10c   :  { %v253_v11 = vpop.permute.xlu0 %252 }
 0x10d   :  { %v255_v14 = vmul.f32 %v253_v11, %v247_v12 }
 0x10f   :  { %257 = vrot.lane.b32.xlu1 %v255_v14, %s1410_s0 }
 0x144   :  { %v290_v32 = vpop.permute.xlu0 %289 }
 0x145   :  { %v292_v33 = vmul.f32 %v290_v32, %v284_v31 }
 0x147   :  { %294 = vrot.lane.b32.xlu1 %v292_v33, %s1410_s0 }
 0x181   :  { %v258_v36 = vpop.permute.xlu1 %257 }
 0x182   :  { %v1619_v37 = vadd.f32 %v258_v36, %v250_v35 }
 0x184   :  { %1289 = vtanh.f32 %v1619_v37 }
 0x18a   :  { %v1290_v38 = vpop.eup %1289 }
 0x18b   :  { %263 = vrot.lane.b32.xlu2 %v1290_v38, %s1410_s0 }
 0x1b9   :  { %v295_v41 = vpop.permute.xlu1 %294 }
 0x1ba   :  { %v1623_v42 = vadd.f32 %v295_v41, %v287_v40 }
 0x1bc   :  { %1291 = vtanh.f32 %v1623_v42 }
 0x1c2   :  { %v1292_v44 = vpop.eup %1291 }
 0x1c3   :  { %300 = vrot.lane.b32.xlu2 %v1292_v44, %s1410_s0 }
 0x1e5   :  { %v264_v45 = vpop.permute.xlu2 %263 }
 0x1e6   :  { %v266_v47 = vmul.f32 %v264_v45, %v247_v12 }
 0x1e8   :  { %307 = vrot.lane.b32.xlu0 %v266_v47, %s1411_s4 }
 0x21d   :  { %v301_v49 = vpop.permute.xlu2 %300 }
 0x21e   :  { %v303_v51 = vmul.f32 %v301_v49, %v284_v31 }
 0x220   :  { %335 = vrot.lane.b32.xlu1 %v303_v51, %s1411_s4 }
 0x25a   :  { %v308_v53 = vpop.permute.xlu0 %307 }
 0x25b   :  { %1245 = vmatmul.msk.f32.vlgmr.msrb.gmra.mxu2 %vm182_vm9, %v308_v53 }
 0x25c   :  { %583 = vmatpush.msrb.mxu2 %v1464_v6 }
 0x25e   :  { %584 = vmatpush.msrb.mxu2 %v1469_v7 }
 0x260   :  { %585 = vmatpush.msrb.mxu2 %v1481_v10 }
 0x262   :  { %586 = vmatpush.msrb.mxu2 %v1493_v13 }
 0x292   :  { %v336_v55 = vpop.permute.xlu1 %335 }
 0x293   :  { %1246 = vmatmul.msk.f32.vlgmr.msrb.gmra.mxu3 %vm182_vm9, %v336_v55 }
 0x294   :  { %611 = vmatpush.msrb.mxu3 %v1532_v23 }
 0x296   :  { %612 = vmatpush.msrb.mxu3 %v1537_v24 }
 0x298   :  { %613 = vmatpush.msrb.mxu3 %v1552_v26 }
 0x29a   :  { %614 = vmatpush.msrb.mxu3 %v1557_v27 }
 0x2de   :  { %v328_v58 = vpop.f32.mrf.mxu2 }
 0x2df   :  { %v331_v59 = vadd.f32 %v328_v58, %v96_v57 }
 0x2e1   :  { %1293 = vtanh.f32 %v331_v59  ;;  %v1247_v61 = vmul.f32 -1.442695, %v331_v59  ;;  %v98_v59 = vpop.f32.mrf.mxu0 }
 0x2e3   :  { %1295 = vpow2.f32 %v1247_v61 }
 0x2e7   :  { %v1294_v60 = vpop.eup %1293 }
 0x2e8   :  { %382 = vrot.lane.b32.xlu2 %v1294_v60, %s1410_s0  ;;  %v99_v60 = vadd.f32 %v98_v59, %v1598_v34 }
 0x2e9   :  { %v1296_v0 = vpop.eup %1295 }
 0x2ea   :  { %v363_v2 = vadd.f32 1.0, %v1296_v0 }
 0x2ec   :  { %v375_v11 = vand.u32 2147483648, %v363_v2  ;;  %vm369_vm11 = vweird.f32 %v363_v2  ;;  %v373_v12 = vand.u32 2147483647, %v363_v2 }
 0x2ee   :  { %vm374_vm13 = vcmp.eq.f32.partialorder %v373_v12, 8.507059e+37 }
 0x316   :  { %v356_v62 = vpop.f32.mrf.mxu3 }
 0x317   :  { %v359_v63 = vadd.f32 %v356_v62, %v1614_v54  ;;  %v376_v54 = vor.u32 1.1754944e-38, %v375_v11 }
 0x319   :  { %1297 = vtanh.f32 %v359_v63  ;;  %v1248_v18 = vmul.f32 -1.442695, %v359_v63 }
 0x31a   :  { %1299 = vrcp.f32 %v363_v2 }
 0x31b   :  { %1301 = vpow2.f32 %v1248_v18 }
 0x31f   :  { %v1298_v1 = vpop.eup %1297 }
 0x320   :  { %419 = vrot.lane.b32.xlu0 %v1298_v1, %s1410_s0  ;;  %v1300_v3 = vpop.eup %1299 }
 0x321   :  { %v365_v4 = vmul.f32 %v1300_v3, %v363_v2  ;;  %vm370_vm10 = vweird.f32 %v1300_v3  ;;  %v1302_v19 = vpop.eup %1301 }
 0x322   :  { %vm371_vm12 = vmor %vm369_vm11, %vm370_vm10  ;;  %v400_v20 = vadd.f32 1.0, %v1302_v19 }
 0x323   :  { %v366_v5 = vsub.f32 1.0, %v365_v4 }
 0x324   :  { %1303 = vrcp.f32 %v400_v20  ;;  %v412_v30 = vand.u32 2147483648, %v400_v20  ;;  %vm406_vm15 = vweird.f32 %v400_v20  ;;  %v410_v31 = vand.u32 2147483647, %v400_v20 }
 0x325   :  { %v367_v8 = vmul.f32 %v1300_v3, %v366_v5 }
 0x326   :  { %v413_v33 = vor.u32 1.1754944e-38, %v412_v30  ;;  %vm411_vm2 = vcmp.eq.f32.partialorder %v410_v31, 8.507059e+37 }
 0x327   :  { %v368_v9 = vadd.f32 %v1300_v3, %v367_v8 }
 0x329   :  { %v372_v14 = vsel %vm371_vm12, %v1300_v3, %v368_v9 }
 0x32a   :  { %v377_v15 = vsel %vm374_vm13, %v376_v54, %v372_v14  ;;  %v1304_v21 = vpop.eup %1303 }
 0x32b   :  { %v402_v22 = vmul.f32 %v1304_v21, %v400_v20  ;;  %vm407_vm14 = vweird.f32 %v1304_v21  ;;  %v380_v40 = vmul.f32 %v377_v15, %v1619_v37 }
 0x32c   :  { %vm408_vm1 = vmor %vm406_vm15, %vm407_vm14 }
 0x32d   :  { %v403_v25 = vsub.f32 1.0, %v402_v22 }
 0x32f   :  { %v404_v28 = vmul.f32 %v1304_v21, %v403_v25 }
 0x331   :  { %v405_v29 = vadd.f32 %v1304_v21, %v404_v28 }
 0x333   :  { %v409_v32 = vsel %vm408_vm1, %v1304_v21, %v405_v29 }
 0x334   :  { %v414_v36 = vsel %vm411_vm2, %v413_v33, %v409_v32 }
 0x335   :  { %v417_v47 = vmul.f32 %v414_v36, %v1623_v42 }
 0x342   :  { %v383_v16 = vpop.permute.xlu2 %382 }
 0x343   :  { %v385_v17 = vmul.f32 %v383_v16, %v377_v15 }
 0x345   :  { %387 = vrot.lane.b32.xlu1 %v385_v17, %s1410_s0 }
 0x392   :  { %v420_v35 = vpop.permute.xlu0 %419 }
 0x393   :  { %v422_v38 = vmul.f32 %v420_v35, %v414_v36 }
 0x395   :  { %424 = vrot.lane.b32.xlu2 %v422_v38, %s1410_s0 }
 0x3b7   :  { %v388_v41 = vpop.permute.xlu1 %387 }
 0x3b8   :  { %v1646_v44 = vadd.f32 %v388_v41, %v380_v40 }
 0x3ba   :  { %1305 = vtanh.f32 %v1646_v44 }
 0x3c0   :  { %v1306_v45 = vpop.eup %1305 }
 0x3c1   :  { %393 = vrot.lane.b32.xlu0 %v1306_v45, %s1410_s0 }
 0x3ef   :  { %v425_v49 = vpop.permute.xlu2 %424 }
 0x3f0   :  { %v1651_v51 = vadd.f32 %v425_v49, %v417_v47 }
 0x3f2   :  { %1307 = vtanh.f32 %v1651_v51 }
 0x3f8   :  { %v1308_v53 = vpop.eup %1307 }
 0x3f9   :  { %430 = vrot.lane.b32.xlu1 %v1308_v53, %s1410_s0 }
 0x433   :  { %v394_v55 = vpop.permute.xlu0 %393 }
 0x434   :  { %v396_v37 = vmul.f32 %v394_v55, %v377_v15 }
 0x436   :  { %437 = vrot.lane.b32.xlu2 %v396_v37, %s1411_s4 }
 0x46b   :  { %v431_v56 = vpop.permute.xlu1 %430 }
 0x46c   :  { %v433_v57 = vmul.f32 %v431_v56, %v414_v36 }
 0x46e   :  { %465 = vrot.lane.b32.xlu0 %v433_v57, %s1411_s4 }
 0x490   :  { %v438_v58 = vpop.permute.xlu2 %437 }
 0x491   :  { %1249 = vmatmul.msk.f32.vlgmr.msra.gmra.mxu2 %vm182_vm9, %v438_v58 }
 0x492   :  { %713 = vmatpush.msra.mxu2 %v1464_v6 }
 0x494   :  { %714 = vmatpush.msra.mxu2 %v1469_v7 }
 0x496   :  { %715 = vmatpush.msra.mxu2 %v1481_v10 }
 0x498   :  { %716 = vmatpush.msra.mxu2 %v1493_v13 }
 0x4e0   :  { %v466_v42 = vpop.permute.xlu0 %465 }
 0x4e1   :  { %1250 = vmatmul.msk.f32.vlgmr.msra.gmra.mxu3 %vm182_vm9, %v466_v42 }
 0x4e2   :  { %741 = vmatpush.msra.mxu3 %v1532_v23 }
 0x4e4   :  { %742 = vmatpush.msra.mxu3 %v1537_v24 }
 0x4e6   :  { %743 = vmatpush.msra.mxu3 %v1552_v26 }
 0x4e8   :  { %744 = vmatpush.msra.mxu3 %v1557_v27 }
 0x514   :  { %v458_v61 = vpop.f32.mrf.mxu2 }
 0x515   :  { %v461_v62 = vadd.f32 %v458_v61, %v99_v60  ;;  %v101_v61 = vpop.f32.mrf.mxu0 }
 0x517   :  { %1309 = vtanh.f32 %v461_v62  ;;  %v1251_v0 = vmul.f32 -1.442695, %v461_v62  ;;  %v102_v62 = vadd.f32 %v101_v61, %v1598_v34 }
 0x519   :  { %1311 = vpow2.f32 %v1251_v0 }
 0x51d   :  { %v1310_v63 = vpop.eup %1309 }
 0x51e   :  { %512 = vrot.lane.b32.xlu1 %v1310_v63, %s1410_s0 }
 0x51f   :  { %v1312_v3 = vpop.eup %1311 }
 0x520   :  { %v493_v5 = vadd.f32 1.0, %v1312_v3 }
 0x522   :  { %v505_v54 = vand.u32 2147483648, %v493_v5  ;;  %vm499_vm4 = vweird.f32 %v493_v5  ;;  %v503_v15 = vand.u32 2147483647, %v493_v5 }
 0x524   :  { %vm504_vm6 = vcmp.eq.f32.partialorder %v503_v15, 8.507059e+37 }
 0x564   :  { %v486_v1 = vpop.f32.mrf.mxu3 }
 0x565   :  { %v489_v2 = vadd.f32 %v486_v1, %v1612_v52  ;;  %v506_v52 = vor.u32 1.1754944e-38, %v505_v54 }
 0x567   :  { %1313 = vtanh.f32 %v489_v2  ;;  %v1252_v20 = vmul.f32 -1.442695, %v489_v2 }
 0x568   :  { %1315 = vrcp.f32 %v493_v5 }
 0x569   :  { %1317 = vpow2.f32 %v1252_v20 }
 0x56d   :  { %v1314_v4 = vpop.eup %1313 }
 0x56e   :  { %549 = vrot.lane.b32.xlu2 %v1314_v4, %s1410_s0  ;;  %v1316_v8 = vpop.eup %1315 }
 0x56f   :  { %v495_v9 = vmul.f32 %v1316_v8, %v493_v5  ;;  %vm500_vm3 = vweird.f32 %v1316_v8  ;;  %v1318_v21 = vpop.eup %1317 }
 0x570   :  { %vm501_vm5 = vmor %vm499_vm4, %vm500_vm3  ;;  %v530_v22 = vadd.f32 1.0, %v1318_v21 }
 0x571   :  { %v496_v11 = vsub.f32 1.0, %v495_v9 }
 0x572   :  { %1319 = vrcp.f32 %v530_v22  ;;  %v542_v32 = vand.u32 2147483648, %v530_v22  ;;  %vm536_vm8 = vweird.f32 %v530_v22  ;;  %v540_v33 = vand.u32 2147483647, %v530_v22 }
 0x573   :  { %v497_v12 = vmul.f32 %v1316_v8, %v496_v11 }
 0x574   :  { %v543_v36 = vor.u32 1.1754944e-38, %v542_v32  ;;  %vm541_vm11 = vcmp.eq.f32.partialorder %v540_v33, 8.507059e+37 }
 0x575   :  { %v498_v14 = vadd.f32 %v1316_v8, %v497_v12 }
 0x577   :  { %v502_v16 = vsel %vm501_vm5, %v1316_v8, %v498_v14 }
 0x578   :  { %v507_v18 = vsel %vm504_vm6, %v506_v52, %v502_v16  ;;  %v1320_v25 = vpop.eup %1319 }
 0x579   :  { %v532_v28 = vmul.f32 %v1320_v25, %v530_v22  ;;  %vm537_vm7 = vweird.f32 %v1320_v25  ;;  %v510_v45 = vmul.f32 %v507_v18, %v1646_v44 }
 0x57a   :  { %vm538_vm10 = vmor %vm536_vm8, %vm537_vm7 }
 0x57b   :  { %v533_v29 = vsub.f32 1.0, %v532_v28 }
 0x57d   :  { %v534_v30 = vmul.f32 %v1320_v25, %v533_v29 }
 0x57f   :  { %v535_v31 = vadd.f32 %v1320_v25, %v534_v30 }
 0x581   :  { %v539_v35 = vsel %vm538_vm10, %v1320_v25, %v535_v31 }
 0x582   :  { %v544_v38 = vsel %vm541_vm11, %v543_v36, %v539_v35 }
 0x583   :  { %v547_v55 = vmul.f32 %v544_v38, %v1651_v51 }
 0x590   :  { %v513_v17 = vpop.permute.xlu1 %512 }
 0x591   :  { %v515_v19 = vmul.f32 %v513_v17, %v507_v18 }
 0x593   :  { %517 = vrot.lane.b32.xlu0 %v515_v19, %s1410_s0 }
 0x5c8   :  { %v550_v40 = vpop.permute.xlu2 %549 }
 0x5c9   :  { %v552_v41 = vmul.f32 %v550_v40, %v544_v38 }
 0x5cb   :  { %554 = vrot.lane.b32.xlu1 %v552_v41, %s1410_s0 }
 0x605   :  { %v518_v47 = vpop.permute.xlu0 %517 }
 0x606   :  { %v1674_v49 = vadd.f32 %v518_v47, %v510_v45 }
 0x608   :  { %1321 = vtanh.f32 %v1674_v49 }
 0x60e   :  { %v1322_v53 = vpop.eup %1321 }
 0x60f   :  { %523 = vrot.lane.b32.xlu2 %v1322_v53, %s1410_s0 }
 0x63d   :  { %v555_v37 = vpop.permute.xlu1 %554 }
 0x63e   :  { %v1679_v56 = vadd.f32 %v555_v37, %v547_v55 }
 0x640   :  { %1323 = vtanh.f32 %v1679_v56 }
 0x646   :  { %v1324_v57 = vpop.eup %1323 }
 0x647   :  { %560 = vrot.lane.b32.xlu0 %v1324_v57, %s1410_s0 }
 0x669   :  { %v524_v58 = vpop.permute.xlu2 %523 }
 0x66a   :  { %v526_v44 = vmul.f32 %v524_v58, %v507_v18 }
 0x66c   :  { %567 = vrot.lane.b32.xlu1 %v526_v44, %s1411_s4 }
 0x6b9   :  { %v561_v42 = vpop.permute.xlu0 %560 }
 0x6ba   :  { %v563_v59 = vmul.f32 %v561_v42, %v544_v38 }
 0x6bc   :  { %595 = vrot.lane.b32.xlu2 %v563_v59, %s1411_s4 }
 0x6de   :  { %v568_v60 = vpop.permute.xlu1 %567 }
 0x6df   :  { %1253 = vmatmul.msk.f32.vlgmr.msrb.gmra.mxu2 %vm182_vm9, %v568_v60 }
 0x6e0   :  { %843 = vmatpush.msrb.mxu2 %v1464_v6 }
 0x6e2   :  { %844 = vmatpush.msrb.mxu2 %v1469_v7 }
 0x6e4   :  { %845 = vmatpush.msrb.mxu2 %v1481_v10 }
 0x6e6   :  { %846 = vmatpush.msrb.mxu2 %v1493_v13 }
 0x716   :  { %v596_v51 = vpop.permute.xlu2 %595 }
 0x717   :  { %1254 = vmatmul.msk.f32.vlgmr.msrb.gmra.mxu3 %vm182_vm9, %v596_v51 }
 0x718   :  { %871 = vmatpush.msrb.mxu3 %v1532_v23 }
 0x71a   :  { %872 = vmatpush.msrb.mxu3 %v1537_v24 }
 0x71c   :  { %873 = vmatpush.msrb.mxu3 %v1552_v26 }
 0x71e   :  { %874 = vmatpush.msrb.mxu3 %v1557_v27 }
 0x762   :  { %v588_v63 = vpop.f32.mrf.mxu2 }
 0x763   :  { %v591_v0 = vadd.f32 %v588_v63, %v102_v62  ;;  %v104_v62 = vpop.f32.mrf.mxu0 }
 0x765   :  { %1325 = vtanh.f32 %v591_v0  ;;  %v1255_v5 = vmul.f32 -1.442695, %v591_v0 }
 0x76b   :  { %v1326_v1 = vpop.eup %1325 }
 0x76c   :  { %642 = vrot.lane.b32.xlu0 %v1326_v1, %s1410_s0 }
 0x79a   :  { %v616_v2 = vpop.f32.mrf.mxu3 }
 0x79b   :  { %v619_v3 = vadd.f32 %v616_v2, %v1610_v50 }
 0x79d   :  { %1327 = vtanh.f32 %v619_v3  ;;  %v1256_v21 = vmul.f32 -1.442695, %v619_v3 }
 0x79e   :  { %1329 = vpow2.f32 %v1255_v5 }
 0x7a3   :  { %v1328_v4 = vpop.eup %1327 }
 0x7a4   :  { %679 = vrot.lane.b32.xlu1 %v1328_v4, %s1410_s0  ;;  %v1330_v8 = vpop.eup %1329 }
 0x7a5   :  { %v623_v9 = vadd.f32 1.0, %v1330_v8 }
 0x7a7   :  { %1331 = vrcp.f32 %v623_v9  ;;  %v635_v16 = vand.u32 2147483648, %v623_v9  ;;  %vm629_vm13 = vweird.f32 %v623_v9  ;;  %v633_v52 = vand.u32 2147483647, %v623_v9 }
 0x7a8   :  { %1333 = vpow2.f32 %v1256_v21 }
 0x7a9   :  { %v636_v17 = vor.u32 1.1754944e-38, %v635_v16  ;;  %vm634_vm15 = vcmp.eq.f32.partialorder %v633_v52, 8.507059e+37 }
 0x7ad   :  { %v1332_v11 = vpop.eup %1331 }
 0x7ae   :  { %v625_v12 = vmul.f32 %v1332_v11, %v623_v9  ;;  %vm630_vm12 = vweird.f32 %v1332_v11  ;;  %v1334_v22 = vpop.eup %1333 }
 0x7af   :  { %vm631_vm14 = vmor %vm629_vm13, %vm630_vm12  ;;  %v660_v25 = vadd.f32 1.0, %v1334_v22 }
 0x7b0   :  { %v626_v14 = vsub.f32 1.0, %v625_v12 }
 0x7b1   :  { %1335 = vrcp.f32 %v660_v25  ;;  %v672_v33 = vand.u32 2147483648, %v660_v25  ;;  %vm666_vm2 = vweird.f32 %v660_v25  ;;  %v670_v35 = vand.u32 2147483647, %v660_v25 }
 0x7b2   :  { %v627_v54 = vmul.f32 %v1332_v11, %v626_v14 }
 0x7b3   :  { %v673_v38 = vor.u32 1.1754944e-38, %v672_v33  ;;  %vm671_vm4 = vcmp.eq.f32.partialorder %v670_v35, 8.507059e+37 }
 0x7b4   :  { %v628_v15 = vadd.f32 %v1332_v11, %v627_v54 }
 0x7b6   :  { %v632_v50 = vsel %vm631_vm14, %v1332_v11, %v628_v15 }
 0x7b7   :  { %v637_v19 = vsel %vm634_vm15, %v636_v17, %v632_v50  ;;  %v1336_v28 = vpop.eup %1335 }
 0x7b8   :  { %v662_v29 = vmul.f32 %v1336_v28, %v660_v25  ;;  %vm667_vm1 = vweird.f32 %v1336_v28  ;;  %v640_v47 = vmul.f32 %v637_v19, %v1674_v49 }
 0x7b9   :  { %vm668_vm3 = vmor %vm666_vm2, %vm667_vm1 }
 0x7ba   :  { %v663_v30 = vsub.f32 1.0, %v662_v29 }
 0x7bc   :  { %v664_v31 = vmul.f32 %v1336_v28, %v663_v30 }
 0x7be   :  { %v665_v32 = vadd.f32 %v1336_v28, %v664_v31 }
 0x7c0   :  { %v669_v36 = vsel %vm668_vm3, %v1336_v28, %v665_v32 }
 0x7c1   :  { %v674_v41 = vsel %vm671_vm4, %v673_v38, %v669_v36 }
 0x7c2   :  { %v677_v57 = vmul.f32 %v674_v41, %v1679_v56 }
 0x7de   :  { %v643_v18 = vpop.permute.xlu0 %642 }
 0x7df   :  { %v645_v20 = vmul.f32 %v643_v18, %v637_v19 }
 0x7e1   :  { %647 = vrot.lane.b32.xlu2 %v645_v20, %s1410_s0 }
 0x816   :  { %v680_v40 = vpop.permute.xlu1 %679 }
 0x817   :  { %v682_v45 = vmul.f32 %v680_v40, %v674_v41 }
 0x819   :  { %684 = vrot.lane.b32.xlu0 %v682_v45, %s1410_s0 }
 0x83b   :  { %v648_v53 = vpop.permute.xlu2 %647 }
 0x83c   :  { %v1702_v55 = vadd.f32 %v648_v53, %v640_v47 }
 0x83e   :  { %1337 = vtanh.f32 %v1702_v55 }
 0x844   :  { %v1338_v37 = vpop.eup %1337 }
 0x845   :  { %653 = vrot.lane.b32.xlu1 %v1338_v37, %s1410_s0 }
 0x88b   :  { %v685_v58 = vpop.permute.xlu0 %684 }
 0x88c   :  { %v1707_v44 = vadd.f32 %v685_v58, %v677_v57 }
 0x88e   :  { %1339 = vtanh.f32 %v1707_v44 }
 0x894   :  { %v1340_v42 = vpop.eup %1339 }
 0x895   :  { %690 = vrot.lane.b32.xlu2 %v1340_v42, %s1410_s0 }
 0x8b7   :  { %v654_v59 = vpop.permute.xlu1 %653 }
 0x8b8   :  { %v656_v49 = vmul.f32 %v654_v59, %v637_v19 }
 0x8ba   :  { %697 = vrot.lane.b32.xlu0 %v656_v49, %s1411_s4 }
 0x8ef   :  { %v691_v60 = vpop.permute.xlu2 %690 }
 0x8f0   :  { %v693_v51 = vmul.f32 %v691_v60, %v674_v41  ;;  %v1406_v60 = vld [vmem:[%s1816_s2 + $0x10] sm:$0xff] }
 0x8f2   :  { %725 = vrot.lane.b32.xlu1 %v693_v51, %s1411_s4  ;;  %v1407_v51 = vld [vmem:[%s1816_s2 + $0x8] sm:$0xff] }
 0x92c   :  { %v698_v61 = vpop.permute.xlu0 %697 }
 0x92d   :  { %1257 = vmatmul.msk.f32.vlgmr.msra.gmra.mxu2 %vm182_vm9, %v698_v61  ;;  %v1408_v61 = vld [vmem:[%s1816_s2] sm:$0xff] }
 0x92e   :  { %973 = vmatpush.msra.mxu2 %v1464_v6  ;;  %v105_v6 = vadd.f32 %v104_v62, %v1598_v34  ;;  %v107_v62 = vpop.f32.mrf.mxu0 }
 0x930   :  { %974 = vmatpush.msra.mxu2 %v1469_v7 }
 0x932   :  { %975 = vmatpush.msra.mxu2 %v1481_v10 }
 0x934   :  { %976 = vmatpush.msra.mxu2 %v1493_v13 }
 0x964   :  { %v726_v56 = vpop.permute.xlu1 %725 }
 0x965   :  { %1258 = vmatmul.msk.f32.vlgmr.msra.gmra.mxu3 %vm182_vm9, %v726_v56 }
 0x966   :  { %1001 = vmatpush.msra.mxu3 %v1532_v23 }
 0x968   :  { %1002 = vmatpush.msra.mxu3 %v1537_v24 }
 0x96a   :  { %1003 = vmatpush.msra.mxu3 %v1552_v26 }
 0x96c   :  { %1004 = vmatpush.msra.mxu3 %v1557_v27 }
 0x9b0   :  { %v718_v63 = vpop.f32.mrf.mxu2 }
 0x9b1   :  { %v721_v7 = vadd.f32 %v718_v63, %v105_v6  ;;  %v108_v6 = vadd.f32 %v107_v62, %v1598_v34 }
 0x9b3   :  { %1341 = vtanh.f32 %v721_v7  ;;  %v1259_v13 = vmul.f32 -1.442695, %v721_v7 }
 0x9b5   :  { %1343 = vpow2.f32 %v1259_v13 }
 0x9b9   :  { %v1342_v10 = vpop.eup %1341 }
 0x9ba   :  { %772 = vrot.lane.b32.xlu2 %v1342_v10, %s1410_s0 }
 0x9bb   :  { %v1344_v2 = vpop.eup %1343 }
 0x9bc   :  { %v753_v4 = vadd.f32 1.0, %v1344_v2 }
 0x9be   :  { %v765_v14 = vand.u32 2147483648, %v753_v4  ;;  %vm759_vm6 = vweird.f32 %v753_v4  ;;  %v763_v54 = vand.u32 2147483647, %v753_v4 }
 0x9c0   :  { %vm764_vm8 = vcmp.eq.f32.partialorder %v763_v54, 8.507059e+37 }
 0x9e8   :  { %v746_v0 = vpop.f32.mrf.mxu3 }
 0x9e9   :  { %v749_v1 = vadd.f32 %v746_v0, %v1608_v48  ;;  %v766_v48 = vor.u32 1.1754944e-38, %v765_v14 }
 0x9eb   :  { %1345 = vtanh.f32 %v749_v1  ;;  %v1260_v17 = vmul.f32 -1.442695, %v749_v1 }
 0x9ec   :  { %1347 = vrcp.f32 %v753_v4 }
 0x9ed   :  { %1349 = vpow2.f32 %v1260_v17 }
 0x9f1   :  { %v1346_v3 = vpop.eup %1345 }
 0x9f2   :  { %809 = vrot.lane.b32.xlu0 %v1346_v3, %s1410_s0  ;;  %v1348_v5 = vpop.eup %1347 }
 0x9f3   :  { %v755_v8 = vmul.f32 %v1348_v5, %v753_v4  ;;  %vm760_vm5 = vweird.f32 %v1348_v5  ;;  %v1350_v18 = vpop.eup %1349 }
 0x9f4   :  { %vm761_vm7 = vmor %vm759_vm6, %vm760_vm5  ;;  %v790_v19 = vadd.f32 1.0, %v1350_v18 }
 0x9f5   :  { %v756_v9 = vsub.f32 1.0, %v755_v8 }
 0x9f6   :  { %1351 = vrcp.f32 %v790_v19  ;;  %v802_v29 = vand.u32 2147483648, %v790_v19  ;;  %vm796_vm11 = vweird.f32 %v790_v19  ;;  %v800_v30 = vand.u32 2147483647, %v790_v19 }
 0x9f7   :  { %v757_v11 = vmul.f32 %v1348_v5, %v756_v9 }
 0x9f8   :  { %v803_v32 = vor.u32 1.1754944e-38, %v802_v29  ;;  %vm801_vm13 = vcmp.eq.f32.partialorder %v800_v30, 8.507059e+37 }
 0x9f9   :  { %v758_v12 = vadd.f32 %v1348_v5, %v757_v11 }
 0x9fb   :  { %v762_v15 = vsel %vm761_vm7, %v1348_v5, %v758_v12 }
 0x9fc   :  { %v767_v16 = vsel %vm764_vm8, %v766_v48, %v762_v15  ;;  %v1352_v20 = vpop.eup %1351 }
 0x9fd   :  { %v792_v21 = vmul.f32 %v1352_v20, %v790_v19  ;;  %vm797_vm10 = vweird.f32 %v1352_v20  ;;  %v770_v38 = vmul.f32 %v767_v16, %v1702_v55 }
 0x9fe   :  { %vm798_vm12 = vmor %vm796_vm11, %vm797_vm10 }
 0x9ff   :  { %v793_v22 = vsub.f32 1.0, %v792_v21 }
 0xa01   :  { %v794_v25 = vmul.f32 %v1352_v20, %v793_v22 }
 0xa03   :  { %v795_v28 = vadd.f32 %v1352_v20, %v794_v25 }
 0xa05   :  { %v799_v31 = vsel %vm798_vm12, %v1352_v20, %v795_v28 }
 0xa06   :  { %v804_v35 = vsel %vm801_vm13, %v803_v32, %v799_v31 }
 0xa07   :  { %v807_v47 = vmul.f32 %v804_v35, %v1707_v44  ;;  %v1405_v44 = vld [vmem:[%s1816_s2 + $0x18] sm:$0xff]  ;;  %s1412_s2 = smov 96  }
 0xa14   :  { %v773_v52 = vpop.permute.xlu2 %772 }
 0xa15   :  { %v775_v50 = vmul.f32 %v773_v52, %v767_v16 }
 0xa17   :  { %777 = vrot.lane.b32.xlu1 %v775_v50, %s1410_s0 }
 0xa64   :  { %v810_v33 = vpop.permute.xlu0 %809 }
 0xa65   :  { %v812_v36 = vmul.f32 %v810_v33, %v804_v35 }
 0xa67   :  { %814 = vrot.lane.b32.xlu2 %v812_v36, %s1410_s0 }
 0xa89   :  { %v778_v40 = vpop.permute.xlu1 %777 }
 0xa8a   :  { %v1730_v41 = vadd.f32 %v778_v40, %v770_v38 }
 0xa8c   :  { %1353 = vtanh.f32 %v1730_v41 }
 0xa92   :  { %v1354_v45 = vpop.eup %1353 }
 0xa93   :  { %783 = vrot.lane.b32.xlu0 %v1354_v45, %s1410_s0 }
 0xac1   :  { %v815_v53 = vpop.permute.xlu2 %814 }
 0xac2   :  { %v1735_v37 = vadd.f32 %v815_v53, %v807_v47 }
 0xac4   :  { %1355 = vtanh.f32 %v1735_v37 }
 0xaca   :  { %v1356_v57 = vpop.eup %1355 }
 0xacb   :  { %820 = vrot.lane.b32.xlu1 %v1356_v57, %s1410_s0 }
 0xb05   :  { %v784_v58 = vpop.permute.xlu0 %783 }
 0xb06   :  { %v786_v55 = vmul.f32 %v784_v58, %v767_v16 }
 0xb08   :  { %827 = vrot.lane.b32.xlu2 %v786_v55, %s1411_s4  ;;  %v110_v55 = vpop.f32.mrf.mxu0 }
 0xb3d   :  { %v821_v42 = vpop.permute.xlu1 %820 }
 0xb3e   :  { %v823_v59 = vmul.f32 %v821_v42, %v804_v35  ;;  %v111_v42 = vadd.f32 %v110_v55, %v1598_v34 }
 0xb40   :  { %855 = vrot.lane.b32.xlu0 %v823_v59, %s1411_s4 }
 0xb62   :  { %v828_v49 = vpop.permute.xlu2 %827 }
 0xb63   :  { %1261 = vmatmul.msk.f32.vlgmr.msrb.gmra.mxu2 %vm182_vm9, %v828_v49 }
 0xb64   :  { %1103 = vmatpush.msrb.mxu2 %v1405_v44 }
 0xb66   :  { %1104 = vmatpush.msrb.mxu2 %v1406_v60 }
 0xb68   :  { %1105 = vmatpush.msrb.mxu2 %v1407_v51 }
 0xb6a   :  { %1106 = vmatpush.msrb.mxu2 %v1408_v61 }
 0xbb2   :  { %v856_v56 = vpop.permute.xlu0 %855 }
 0xbb3   :  { %1262 = vmatmul.msk.f32.vlgmr.msrb.gmra.mxu3 %vm182_vm9, %v856_v56 }
 0xbb4   :  { %1130 = vmatpush.msrb.mxu3 %v1532_v23 }
 0xbb6   :  { %1131 = vmatpush.msrb.mxu3 %v1537_v24 }
 0xbb8   :  { %1132 = vmatpush.msrb.mxu3 %v1552_v26 }
 0xbba   :  { %1133 = vmatpush.msrb.mxu3 %v1557_v27 }
 0xbe6   :  { %v848_v63 = vpop.f32.mrf.mxu2 }
 0xbe7   :  { %v851_v7 = vadd.f32 %v848_v63, %v108_v6 }
 0xbe9   :  { %1357 = vtanh.f32 %v851_v7  ;;  %v1263_v13 = vmul.f32 -1.442695, %v851_v7 }
 0xbeb   :  { %1359 = vpow2.f32 %v1263_v13 }
 0xbef   :  { %v1358_v10 = vpop.eup %1357 }
 0xbf0   :  { %902 = vrot.lane.b32.xlu1 %v1358_v10, %s1410_s0 }
 0xbf1   :  { %v1360_v23 = vpop.eup %1359 }
 0xbf2   :  { %v883_v26 = vadd.f32 1.0, %v1360_v23 }
 0xbf4   :  { %v895_v8 = vand.u32 2147483648, %v883_v26  ;;  %vm889_vm15 = vweird.f32 %v883_v26  ;;  %v893_v9 = vand.u32 2147483647, %v883_v26 }
 0xbf6   :  { %vm894_vm2 = vcmp.eq.f32.partialorder %v893_v9, 8.507059e+37 }
 0xc36   :  { %v876_v0 = vpop.f32.mrf.mxu3 }
 0xc37   :  { %v879_v1 = vadd.f32 %v876_v0, %v1606_v46  ;;  %v896_v46 = vor.u32 1.1754944e-38, %v895_v8 }
 0xc39   :  { %1361 = vtanh.f32 %v879_v1  ;;  %v1264_v15 = vmul.f32 -1.442695, %v879_v1 }
 0xc3a   :  { %1363 = vrcp.f32 %v883_v26 }
 0xc3b   :  { %1365 = vpow2.f32 %v1264_v15 }
 0xc3f   :  { %v1362_v24 = vpop.eup %1361 }
 0xc40   :  { %939 = vrot.lane.b32.xlu2 %v1362_v24, %s1410_s0  ;;  %v1364_v27 = vpop.eup %1363 }
 0xc41   :  { %v885_v2 = vmul.f32 %v1364_v27, %v883_v26  ;;  %vm890_vm14 = vweird.f32 %v1364_v27  ;;  %v1366_v48 = vpop.eup %1365 }
 0xc42   :  { %vm891_vm1 = vmor %vm889_vm15, %vm890_vm14  ;;  %v920_v16 = vadd.f32 1.0, %v1366_v48 }
 0xc43   :  { %v886_v3 = vsub.f32 1.0, %v885_v2 }
 0xc44   :  { %1367 = vrcp.f32 %v920_v16  ;;  %v932_v20 = vand.u32 2147483648, %v920_v16  ;;  %vm926_vm4 = vweird.f32 %v920_v16  ;;  %v930_v21 = vand.u32 2147483647, %v920_v16 }
 0xc45   :  { %v887_v4 = vmul.f32 %v1364_v27, %v886_v3 }
 0xc46   :  { %v933_v25 = vor.u32 1.1754944e-38, %v932_v20  ;;  %vm931_vm6 = vcmp.eq.f32.partialorder %v930_v21, 8.507059e+37 }
 0xc47   :  { %v888_v5 = vadd.f32 %v1364_v27, %v887_v4 }
 0xc49   :  { %v892_v11 = vsel %vm891_vm1, %v1364_v27, %v888_v5 }
 0xc4a   :  { %v897_v14 = vsel %vm894_vm2, %v896_v46, %v892_v11  ;;  %v1368_v52 = vpop.eup %1367 }
 0xc4b   :  { %v922_v50 = vmul.f32 %v1368_v52, %v920_v16  ;;  %vm927_vm3 = vweird.f32 %v1368_v52  ;;  %v900_v31 = vmul.f32 %v897_v14, %v1730_v41 }
 0xc4c   :  { %vm928_vm5 = vmor %vm926_vm4, %vm927_vm3 }
 0xc4d   :  { %v923_v17 = vsub.f32 1.0, %v922_v50 }
 0xc4f   :  { %v924_v18 = vmul.f32 %v1368_v52, %v923_v17 }
 0xc51   :  { %v925_v19 = vadd.f32 %v1368_v52, %v924_v18 }
 0xc53   :  { %v929_v22 = vsel %vm928_vm5, %v1368_v52, %v925_v19 }
 0xc54   :  { %v934_v28 = vsel %vm931_vm6, %v933_v25, %v929_v22 }
 0xc55   :  { %v937_v36 = vmul.f32 %v934_v28, %v1735_v37 }
 0xc62   :  { %v903_v12 = vpop.permute.xlu1 %902 }
 0xc63   :  { %v905_v54 = vmul.f32 %v903_v12, %v897_v14 }
 0xc65   :  { %907 = vrot.lane.b32.xlu0 %v905_v54, %s1410_s0 }
 0xc9a   :  { %v940_v29 = vpop.permute.xlu2 %939 }
 0xc9b   :  { %v942_v30 = vmul.f32 %v940_v29, %v934_v28 }
 0xc9d   :  { %944 = vrot.lane.b32.xlu1 %v942_v30, %s1410_s0 }
 0xcd7   :  { %v908_v32 = vpop.permute.xlu0 %907 }
 0xcd8   :  { %v1766_v33 = vadd.f32 %v908_v32, %v900_v31 }
 0xcda   :  { %1369 = vtanh.f32 %v1766_v33 }
 0xce0   :  { %v1370_v35 = vpop.eup %1369 }
 0xce1   :  { %913 = vrot.lane.b32.xlu2 %v1370_v35, %s1410_s0 }
 0xd0f   :  { %v945_v38 = vpop.permute.xlu1 %944 }
 0xd10   :  { %v1771_v40 = vadd.f32 %v945_v38, %v937_v36  ;;  %v113_v36 = vpop.f32.mrf.mxu0 }
 0xd11   :  { %v114_v38 = vadd.f32 %v113_v36, %v1598_v34 }
 0xd12   :  { %1371 = vtanh.f32 %v1771_v40 }
 0xd18   :  { %v1372_v45 = vpop.eup %1371 }
 0xd19   :  { %950 = vrot.lane.b32.xlu0 %v1372_v45, %s1410_s0 }
 0xd3b   :  { %v914_v47 = vpop.permute.xlu2 %913 }
 0xd3c   :  { %v916_v41 = vmul.f32 %v914_v47, %v897_v14 }
 0xd3e   :  { %957 = vrot.lane.b32.xlu1 %v916_v41, %s1411_s4 }
 0xd8b   :  { %v951_v53 = vpop.permute.xlu0 %950 }
 0xd8c   :  { %v953_v57 = vmul.f32 %v951_v53, %v934_v28 }
 0xd8e   :  { %985 = vrot.lane.b32.xlu2 %v953_v57, %s1411_s4 }
 0xdb0   :  { %v958_v58 = vpop.permute.xlu1 %957 }
 0xdb1   :  { %1265 = vmatmul.msk.f32.vlgmr.msra.gmra.mxu2 %vm182_vm9, %v958_v58 }
 0xde8   :  { %v986_v37 = vpop.permute.xlu2 %985 }
 0xde9   :  { %1266 = vmatmul.msk.f32.vlgmr.msra.gmra.mxu3 %vm182_vm9, %v986_v37 }
 0xe34   :  { %v978_v59 = vpop.f32.mrf.mxu2 }
 0xe35   :  { %v981_v49 = vadd.f32 %v978_v59, %v111_v42 }
 0xe37   :  { %1373 = vtanh.f32 %v981_v49  ;;  %v1267_v56 = vmul.f32 -1.442695, %v981_v49 }
 0xe3d   :  { %v1374_v44 = vpop.eup %1373 }
 0xe3e   :  { %1032 = vrot.lane.b32.xlu0 %v1374_v44, %s1410_s0 }
 0xe6c   :  { %v1006_v60 = vpop.f32.mrf.mxu3 }
 0xe6d   :  { %v1009_v51 = vadd.f32 %v1006_v60, %v1603_v43 }
 0xe6f   :  { %1375 = vtanh.f32 %v1009_v51  ;;  %v1268_v3 = vmul.f32 -1.442695, %v1009_v51 }
 0xe70   :  { %1377 = vpow2.f32 %v1267_v56 }
 0xe75   :  { %v1376_v61 = vpop.eup %1375 }
 0xe76   :  { %1069 = vrot.lane.b32.xlu1 %v1376_v61, %s1410_s0  ;;  %v1378_v62 = vpop.eup %1377 }
 0xe77   :  { %v1013_v6 = vadd.f32 1.0, %v1378_v62 }
 0xe79   :  { %1379 = vrcp.f32 %v1013_v6  ;;  %v1025_v1 = vand.u32 2147483648, %v1013_v6  ;;  %vm1019_vm8 = vweird.f32 %v1013_v6  ;;  %v1023_v23 = vand.u32 2147483647, %v1013_v6 }
 0xe7a   :  { %1381 = vpow2.f32 %v1268_v3 }
 0xe7b   :  { %v1026_v24 = vor.u32 1.1754944e-38, %v1025_v1  ;;  %vm1024_vm11 = vcmp.eq.f32.partialorder %v1023_v23, 8.507059e+37 }
 0xe7f   :  { %v1380_v63 = vpop.eup %1379 }
 0xe80   :  { %v1015_v7 = vmul.f32 %v1380_v63, %v1013_v6  ;;  %vm1020_vm7 = vweird.f32 %v1380_v63  ;;  %v1382_v4 = vpop.eup %1381 }
 0xe81   :  { %vm1021_vm10 = vmor %vm1019_vm8, %vm1020_vm7  ;;  %v1050_v5 = vadd.f32 1.0, %v1382_v4 }
 0xe82   :  { %v1016_v10 = vsub.f32 1.0, %v1015_v7 }
 0xe83   :  { %1383 = vrcp.f32 %v1050_v5  ;;  %v1062_v14 = vand.u32 2147483648, %v1050_v5  ;;  %vm1056_vm13 = vweird.f32 %v1050_v5  ;;  %v1060_v54 = vand.u32 2147483647, %v1050_v5 }
 0xe84   :  { %v1017_v13 = vmul.f32 %v1380_v63, %v1016_v10 }
 0xe85   :  { %v1063_v48 = vor.u32 1.1754944e-38, %v1062_v14  ;;  %vm1061_vm15 = vcmp.eq.f32.partialorder %v1060_v54, 8.507059e+37 }
 0xe86   :  { %v1018_v0 = vadd.f32 %v1380_v63, %v1017_v13 }
 0xe88   :  { %v1022_v43 = vsel %vm1021_vm10, %v1380_v63, %v1018_v0 }
 0xe89   :  { %v1027_v27 = vsel %vm1024_vm11, %v1026_v24, %v1022_v43  ;;  %v1384_v8 = vpop.eup %1383 }
 0xe8a   :  { %v1052_v9 = vmul.f32 %v1384_v8, %v1050_v5  ;;  %vm1057_vm12 = vweird.f32 %v1384_v8  ;;  %v1030_v17 = vmul.f32 %v1027_v27, %v1766_v33 }
 0xe8b   :  { %vm1058_vm14 = vmor %vm1056_vm13, %vm1057_vm12 }
 0xe8c   :  { %v1053_v11 = vsub.f32 1.0, %v1052_v9 }
 0xe8e   :  { %v1054_v46 = vmul.f32 %v1384_v8, %v1053_v11 }
 0xe90   :  { %v1055_v12 = vadd.f32 %v1384_v8, %v1054_v46 }
 0xe92   :  { %v1059_v15 = vsel %vm1058_vm14, %v1384_v8, %v1055_v12 }
 0xe93   :  { %v1064_v52 = vsel %vm1061_vm15, %v1063_v48, %v1059_v15 }
 0xe94   :  { %v1067_v21 = vmul.f32 %v1064_v52, %v1771_v40 }
 0xeb0   :  { %v1033_v26 = vpop.permute.xlu0 %1032 }
 0xeb1   :  { %v1035_v2 = vmul.f32 %v1033_v26, %v1027_v27 }
 0xeb3   :  { %1037 = vrot.lane.b32.xlu2 %v1035_v2, %s1410_s0 }
 0xee8   :  { %v1070_v16 = vpop.permute.xlu1 %1069 }
 0xee9   :  { %v1072_v50 = vmul.f32 %v1070_v16, %v1064_v52 }
 0xeeb   :  { %1074 = vrot.lane.b32.xlu0 %v1072_v50, %s1410_s0 }
 0xf0d   :  { %v1038_v18 = vpop.permute.xlu2 %1037 }
 0xf0e   :  { %v1786_v19 = vadd.f32 %v1038_v18, %v1030_v17 }
 0xf10   :  { %1385 = vtanh.f32 %v1786_v19 }
 0xf16   :  { %v1386_v20 = vpop.eup %1385 }
 0xf17   :  { %1043 = vrot.lane.b32.xlu1 %v1386_v20, %s1410_s0 }
 0xf5d   :  { %v1075_v22 = vpop.permute.xlu0 %1074 }
 0xf5e   :  { %v1791_v25 = vadd.f32 %v1075_v22, %v1067_v21 }
 0xf60   :  { %1387 = vtanh.f32 %v1791_v25 }
 0xf66   :  { %v1388_v28 = vpop.eup %1387 }
 0xf67   :  { %1080 = vrot.lane.b32.xlu2 %v1388_v28, %s1410_s0 }
 0xf89   :  { %v1044_v29 = vpop.permute.xlu1 %1043 }
 0xf8a   :  { %v1046_v30 = vmul.f32 %v1044_v29, %v1027_v27 }
 0xf8c   :  { %1087 = vrot.lane.b32.xlu0 %v1046_v30, %s1411_s4 }
 0xfc1   :  { %v1081_v31 = vpop.permute.xlu2 %1080 }
 0xfc2   :  { %v1083_v32 = vmul.f32 %v1081_v31, %v1064_v52 }
 0xfc4   :  { %1114 = vrot.lane.b32.xlu1 %v1083_v32, %s1411_s4 }
 0xffe   :  { %v1088_v33 = vpop.permute.xlu0 %1087 }
 0xfff   :  { %1269 = vmatmul.msk.f32.vlgmr.msrb.gmra.mxu2 %vm182_vm9, %v1088_v33 }
0x1036   :  { %v1115_v35 = vpop.permute.xlu1 %1114 }
0x1037   :  { %1270 = vmatmul.msk.f32.vlgmr.msrb.gmra.mxu3 %vm182_vm9, %v1115_v35 }
0x1082   :  { %v1108_v40 = vpop.f32.mrf.mxu2 }
0x1083   :  { %v1111_v45 = vadd.f32 %v1108_v40, %v114_v38 }
0x1085   :  { %1389 = vtanh.f32 %v1111_v45  ;;  %v1271_v41 = vmul.f32 -1.442695, %v1111_v45 }
0x1087   :  { %1391 = vpow2.f32 %v1271_v41 }
0x108b   :  { %v1390_v47 = vpop.eup %1389 }
0x108c   :  { %1161 = vrot.lane.b32.xlu2 %v1390_v47, %s1410_s0 }
0x108d   :  { %v1392_v58 = vpop.eup %1391 }
0x108e   :  { %v1142_v55 = vadd.f32 1.0, %v1392_v58 }
0x1090   :  { %v1154_v60 = vand.u32 2147483648, %v1142_v55  ;;  %vm1148_vm2 = vweird.f32 %v1142_v55  ;;  %v1152_v51 = vand.u32 2147483647, %v1142_v55 }
0x1092   :  { %vm1153_vm4 = vcmp.eq.f32.partialorder %v1152_v51, 8.507059e+37 }
0x10ba   :  { %v1135_v53 = vpop.f32.mrf.mxu3 }
0x10bb   :  { %v1138_v57 = vadd.f32 %v1135_v53, %v1601_v39  ;;  %v1155_v39 = vor.u32 1.1754944e-38, %v1154_v60 }
0x10bd   :  { %1393 = vtanh.f32 %v1138_v57  ;;  %v1272_v63 = vmul.f32 -1.442695, %v1138_v57 }
0x10be   :  { %1395 = vrcp.f32 %v1142_v55 }
0x10bf   :  { %1397 = vpow2.f32 %v1272_v63 }
0x10c3   :  { %v1394_v37 = vpop.eup %1393 }
0x10c4   :  { %1198 = vrot.lane.b32.xlu0 %v1394_v37, %s1410_s0  ;;  %v1396_v42 = vpop.eup %1395 }
0x10c5   :  { %v1144_v34 = vmul.f32 %v1396_v42, %v1142_v55  ;;  %vm1149_vm1 = vweird.f32 %v1396_v42  ;;  %v1398_v7 = vpop.eup %1397 }
0x10c6   :  { %vm1150_vm3 = vmor %vm1148_vm2, %vm1149_vm1  ;;  %v1179_v10 = vadd.f32 1.0, %v1398_v7 }
0x10c7   :  { %v1145_v59 = vsub.f32 1.0, %v1144_v34 }
0x10c8   :  { %1399 = vrcp.f32 %v1179_v10  ;;  %v1191_v24 = vand.u32 2147483648, %v1179_v10  ;;  %vm1185_vm6 = vweird.f32 %v1179_v10  ;;  %v1189_v26 = vand.u32 2147483647, %v1179_v10 }
0x10c9   :  { %v1146_v49 = vmul.f32 %v1396_v42, %v1145_v59 }
0x10ca   :  { %v1192_v2 = vor.u32 1.1754944e-38, %v1191_v24  ;;  %vm1190_vm8 = vcmp.eq.f32.partialorder %v1189_v26, 8.507059e+37 }
0x10cb   :  { %v1147_v44 = vadd.f32 %v1396_v42, %v1146_v49 }
0x10cd   :  { %v1151_v61 = vsel %vm1150_vm3, %v1396_v42, %v1147_v44 }
0x10ce   :  { %v1156_v56 = vsel %vm1153_vm4, %v1155_v39, %v1151_v61  ;;  %v1400_v13 = vpop.eup %1399 }
0x10cf   :  { %v1181_v0 = vmul.f32 %v1400_v13, %v1179_v10  ;;  %vm1186_vm5 = vweird.f32 %v1400_v13  ;;  %v1159_v8 = vmul.f32 %v1156_v56, %v1786_v19 }
0x10d0   :  { %vm1187_vm7 = vmor %vm1185_vm6, %vm1186_vm5 }
0x10d1   :  { %v1182_v1 = vsub.f32 1.0, %v1181_v0 }
0x10d3   :  { %v1183_v23 = vmul.f32 %v1400_v13, %v1182_v1 }
0x10d5   :  { %v1184_v43 = vadd.f32 %v1400_v13, %v1183_v23 }
0x10d7   :  { %v1188_v27 = vsel %vm1187_vm7, %v1400_v13, %v1184_v43 }
0x10d8   :  { %v1193_v4 = vsel %vm1190_vm8, %v1192_v2, %v1188_v27 }
0x10d9   :  { %v1196_v12 = vmul.f32 %v1193_v4, %v1791_v25 }
0x10e6   :  { %v1162_v62 = vpop.permute.xlu2 %1161 }
0x10e7   :  { %v1164_v6 = vmul.f32 %v1162_v62, %v1156_v56 }
0x10e9   :  { %1166 = vrot.lane.b32.xlu1 %v1164_v6, %s1410_s0 }
0x1136   :  { %v1199_v3 = vpop.permute.xlu0 %1198 }
0x1137   :  { %v1201_v5 = vmul.f32 %v1199_v3, %v1193_v4 }
0x1139   :  { %1203 = vrot.lane.b32.xlu2 %v1201_v5, %s1410_s0 }
0x115b   :  { %v1167_v9 = vpop.permute.xlu1 %1166 }
0x115c   :  { %v1169_v11 = vadd.f32 %v1167_v9, %v1159_v8 }
0x115e   :  { %1401 = vtanh.f32 %v1169_v11 }
0x1164   :  { %v1402_v46 = vpop.eup %1401 }
0x1165   :  { %1172 = vrot.lane.b32.xlu0 %v1402_v46, %s1410_s0 }
0x1193   :  { %v1204_v14 = vpop.permute.xlu2 %1203 }
0x1194   :  { %v1206_v54 = vadd.f32 %v1204_v14, %v1196_v12 }
0x1196   :  { %1403 = vtanh.f32 %v1206_v54 }
0x119c   :  { %v1404_v15 = vpop.eup %1403 }
0x119d   :  { %1209 = vrot.lane.b32.xlu1 %v1404_v15, %s1410_s0 }
0x11d7   :  { %v1173_v48 = vpop.permute.xlu0 %1172 }
0x11d8   :  { %v1175_v16 = vmul.f32 %v1173_v48, %v1156_v56 }
0x11da   :  { %1214 = vrot.lane.b32.xlu2 %v1175_v16, %s1411_s4 }
0x120f   :  { %v1210_v52 = vpop.permute.xlu1 %1209 }
0x1210   :  { %v1212_v50 = vmul.f32 %v1210_v52, %v1193_v4 }
0x1212   :  { %1218 = vrot.lane.b32.xlu0 %v1212_v50, %s1412_s2 }
0x1234   :  { %v1215_v17 = vpop.permute.xlu2 %1214 }
0x1284   :  { %v1219_v18 = vpop.permute.xlu0 %1218 }
0x1285   :  { %v1221_v19 = vsel %vm182_vm9, %v1215_v17, %v1219_v18 }
0x1286   :  { %1222 = vst.msk [vmem:[%s1820_s5] sm:$0xff] %vm50_vm0, %v1221_v19 }

</bundles_post_ra>
